<compile_context>
chip_gen: v5e
topology: v5e:2x2
jax: 0.10.0
libtpu: 0.0.40
codegen_flags: <defaults>
</compile_context>

<pallas_src>
import math

import jax
import jax.numpy as jnp
from jax.experimental import pallas as pl
from jax.experimental.pallas import tpu as pltpu

HID = 128  # conv1 out_channels, fixed by the module definition


def _gelu(x):
    # TODO(synk): PyTorch nn.GELU() defaults to exact-erf GELU; the tanh
    # approximation is used here (erf lowering is not guaranteed in Mosaic).
    c = jnp.sqrt(2.0 / jnp.pi).astype(x.dtype)
    return 0.5 * x * (1.0 + jnp.tanh(c * (x + 0.044715 * x * x * x)))


def _conv_bypass_kernel(x_ref, w1_ref, b1_ref, a_ref, b2_ref, w3_ref, b3_ref,
                        ml_ref, mr_ref, o_ref):
    """One lane-dense batch-block per grid step.

    x_ref  : (C, WL)      VMEM   WL = bt*L_pad, batches fused along the lane axis
    w1_ref : (128, C)     VMEM   conv1 weight (kernel_size=1, squeezed)
    b1_ref : (128, 1)     VMEM   conv1 bias column (sublane broadcast)
    a_ref  : (384, 128)   VMEM   stacked banded conv2 matrices (dx = -1, 0, +1)
    b2_ref : (1,)         SMEM   conv2 bias (scalar)
    w3_ref : (C, 128)     VMEM   conv3 weight (dense 128 -> C per token)
    b3_ref : (C, 1)       VMEM
    ml_ref : (1, WL)      VMEM   precomputed left-neighbour validity mask
    mr_ref : (1, WL)      VMEM   precomputed right-neighbour validity mask
    o_ref  : (C, WL)      VMEM   aliased onto x's HBM buffer
    """
    x = x_ref[...]  # (C, WL) f32

    # ---- conv1 (pointwise C -> 128) + GELU, directly in (128, WL) layout ----
    h = _gelu(jnp.dot(w1_ref[...], x, preferred_element_type=jnp.float32)
              + b1_ref[...])  # (128, WL)

    # ---- conv2: 3x3, single channel, zero padding=1, on each (H=128, W=L) map.
    # Vertical 3-taps for all three horizontal offsets in ONE stacked 384x128
    # banded matmul (single MXU pass); zero first/last off-diagonal rows give
    # the H-boundary zero padding for free.
    vs = jnp.dot(a_ref[...], h, preferred_element_type=jnp.float32)  # (384, WL)
    v_l = vs[0:HID, :]            # dx = -1 taps  (128-aligned sublane slices)
    v_m = vs[HID:2 * HID, :]      # dx =  0 taps
    v_r = vs[2 * HID:3 * HID, :]  # dx = +1 taps
    wl = h.shape[1]
    # Horizontal +-1 taps via lane rolls (XLU); per-batch / padding boundaries
    # handled by wrapper-precomputed masks (no per-step iota/mod on the VPU).
    left = ml_ref[...] * pltpu.roll(v_l, shift=1, axis=1)
    right = mr_ref[...] * pltpu.roll(v_r, shift=wl - 1, axis=1)
    x4 = _gelu(v_m + left + right + b2_ref[0])  # (128, WL)

    # ---- conv3 (dense 128 -> C per token) + residual bypass ------------------
    x5 = jnp.dot(w3_ref[...], x4, preferred_element_type=jnp.float32) + b3_ref[...]
    o_ref[...] = (x + x5).astype(o_ref.dtype)


def _hw_params():
    """(vmem_budget_bytes, prefer_even_grid) derived from the local TPU."""
    vmem_cap = 64 * 2 ** 20           # conservative default (v7x per-TC VMEM)
    prefer_even = False
    try:
        vmem_cap = int(getattr(pltpu.get_tpu_info(), "vmem_capacity_bytes",
                               vmem_cap))
    except Exception:
        pass
    try:
        kind = jax.devices()[0].device_kind.lower()
        prefer_even = "v7" in kind    # 2 TensorCores/chip -> want an even grid
    except Exception:
        pass
    return max(int(0.65 * vmem_cap), 24 * 2 ** 20), prefer_even


def _plan_tiles(B, C, L, vmem_budget, prefer_even):
    """Pick (L_pad, bt, per_lane_bytes): blocks of bt whole (possibly padded)
    rows so every store is a full-width vst and rolls never cross an unmasked
    batch boundary."""
    # ~8 live (128, wl) f32 temps + double-buffered in/out blocks + x5.
    per_lane_bytes = 4 * (4 * C + 8 * HID + C)
    divisors = [d for d in range(1, B + 1) if B % d == 0]
    L_pad = L
    dense = [d for d in divisors if (d * L_pad) % 128 == 0]
    if not dense:
        # Fallback: pad L so the full-batch block is lane-aligned (keeps the
        # lane-dense fast path instead of masked partial stores).
        m = 128 // math.gcd(B, 128)
        L_pad = ((L + m - 1) // m) * m
        dense = [d for d in divisors if (d * L_pad) % 128 == 0]
    fitting = [d for d in dense if 2 * per_lane_bytes * d * L_pad <= vmem_budget]
    if not fitting:
        fitting = [min(dense)]
    bt = max(fitting)                 # largest block that fits (nb=1 ok on 1-TC)
    if prefer_even:
        even = [d for d in fitting if (B // d) % 2 == 0]
        if even:
            bt = max(even)            # keep both v7x TensorCores equally busy
    return L_pad, bt, per_lane_bytes


@jax.jit
def conv_bypass(x0, w1, b1, w2, b2, w3, b3):
    B, C, L = x0.shape
    vmem_budget, prefer_even = _hw_params()
    L_pad, bt, per_lane_bytes = _plan_tiles(B, C, L, vmem_budget, prefer_even)
    nb = B // bt
    wl = bt * L_pad
    tot = B * L_pad

    # Lane-dense activation slab: (B, C, L[_pad]) -> (C, B*L_pad).
    # TODO(synk): in a full model, keep activations in this (C, B*L) layout
    # across adapter layers so these two XLA transposes (extra HBM passes)
    # disappear; here the kernel output at least aliases x_flat's buffer.
    x_in = x0 if L_pad == L else jnp.pad(x0, ((0, 0), (0, 0), (0, L_pad - L)))
    x_flat = jnp.transpose(x_in, (1, 0, 2)).reshape(C, tot)

    # Fold conv2's vertical 3-tap into banded 128x128 matrices (one per dx) and
    # stack them into a single (384, 128) operand -> one in-kernel MXU matmul.
    eye = jnp.eye(HID, dtype=jnp.float32)
    up = jnp.eye(HID, k=1, dtype=jnp.float32)     # (up   @ m)[h] = m[h+1]
    down = jnp.eye(HID, k=-1, dtype=jnp.float32)  # (down @ m)[h] = m[h-1]
    w2f = w2.astype(jnp.float32)
    bands = [w2f[0, k] * down + w2f[1, k] * eye + w2f[2, k] * up
             for k in range(3)]                    # dx = -1, 0, +1
    a_stacked = jnp.concatenate(bands, axis=0)     # (384, 128)

    b1c = b1.reshape(HID, 1).astype(jnp.float32)
    b3c = b3.reshape(C, 1).astype(jnp.float32)

    # Horizontal-neighbour validity masks, identical for every grid step
    # (each block holds whole rows).  Padded columns are masked out.
    j = jnp.arange(wl, dtype=jnp.int32) % L_pad
    mask_l = ((j >= 1) & (j <= L - 1)).astype(jnp.float32).reshape(1, wl)
    mask_r = (j <= L - 2).astype(jnp.float32).reshape(1, wl)

    # Scoped-VMEM budget: per-lane live bytes (see _plan_tiles) + parameters and
    # masks (double-buffered), x2 safety margin, clamped to a capacity-derived
    # ceiling so larger tiles never over-commit VMEM.
    const_bytes = 4 * 2 * (HID * C + HID + 3 * HID * HID + C * HID + C
                           + 2 * wl + 1)
    vmem_limit = int(min(max(2 * (per_lane_bytes * wl + const_bytes),
                             16 * 2 ** 20), vmem_budget))

    cost = pl.CostEstimate(
        flops=2 * tot * (HID * C + 3 * HID * HID + C * HID),
        transcendentals=2 * HID * tot,
        bytes_accessed=4 * (2 * C * tot + HID * C + 3 * HID * HID
                            + C * HID + 2 * wl),
    )

    out_flat = pl.pallas_call(
        _conv_bypass_kernel,
        out_shape=jax.ShapeDtypeStruct((C, tot), x0.dtype),
        grid=(nb,),
        in_specs=[
            pl.BlockSpec((C, wl), lambda i: (0, i)),              # x (lane-dense)
            pl.BlockSpec((HID, C), lambda i: (0, 0)),             # w1
            pl.BlockSpec((HID, 1), lambda i: (0, 0)),             # b1 column
            pl.BlockSpec((3 * HID, HID), lambda i: (0, 0)),       # stacked conv2
            pl.BlockSpec(memory_space=pltpu.MemorySpace.SMEM),    # b2 scalar
            pl.BlockSpec((C, HID), lambda i: (0, 0)),             # w3
            pl.BlockSpec((C, 1), lambda i: (0, 0)),               # b3 column
            pl.BlockSpec((1, wl), lambda i: (0, 0)),              # left mask
            pl.BlockSpec((1, wl), lambda i: (0, 0)),              # right mask
        ],
        out_specs=pl.BlockSpec((C, wl), lambda i: (0, i)),
        input_output_aliases={0: 0},   # write the result into x_flat's buffer
        compiler_params=pltpu.CompilerParams(
            dimension_semantics=("parallel",),
            vmem_limit_bytes=vmem_limit,
        ),
        cost_estimate=cost,
    )(x_flat, w1, b1c, a_stacked, b2, w3, b3c, mask_l, mask_r)

    out = out_flat.reshape(C, B, L_pad).transpose(1, 0, 2)
    return out if L_pad == L else out[:, :, :L]


def ref_forward(x0, w1, b1, w2, b2, w3, b3):
    """Pure-JAX reference of the same interpretation of ConvByPass.forward."""
    x1 = jnp.einsum("bcl,hc->bhl", x0, w1) + b1[None, :, None]        # (B,128,L)
    x2 = _gelu(x1)
    img = x2[:, None, :, :]                                           # (B,1,128,L)
    x3 = jax.lax.conv_general_dilated(
        img, w2[None, None, :, :], window_strides=(1, 1), padding="SAME",
        dimension_numbers=("NCHW", "OIHW", "NCHW")) + b2[0]
    x4 = _gelu(x3)[:, 0]                                              # (B,128,L)
    x5 = jnp.einsum("bhl,ch->bcl", x4, w3) + b3[None, :, None]        # (B,C,L)
    return x0 + x5


if __name__ == "__main__":
    # in_dim = 32, sequence length = 16; B*L = 256 fuses into lane-dense blocks.
    B, C, L = 16, 32, 16

    key = jax.random.PRNGKey(0)
    ks = jax.random.split(key, 7)
    x0 = jax.random.normal(ks[0], (B, C, L), jnp.float32)
    # Deterministic synthetic parameters (shapes from the module's __init__).
    w1 = jax.random.normal(ks[1], (HID, C), jnp.float32) / jnp.sqrt(C)     # Conv1d(C,128,1)
    b1 = jax.random.normal(ks[2], (HID,), jnp.float32) * 0.02
    w2 = jax.random.normal(ks[3], (3, 3), jnp.float32) / 3.0               # Conv2d(1,1,3)
    b2 = jax.random.normal(ks[4], (1,), jnp.float32) * 0.02
    w3 = jax.random.normal(ks[5], (C, HID), jnp.float32) / jnp.sqrt(HID)   # Conv1d(1,C,128)
    b3 = jax.random.normal(ks[6], (C,), jnp.float32) * 0.02

    out = jax.block_until_ready(conv_bypass(x0, w1, b1, w2, b2, w3, b3))

    ref = ref_forward(x0, w1, b1, w2, b2, w3, b3)
    assert out.shape == x0.shape and out.dtype == x0.dtype
    assert jnp.allclose(out, ref, atol=1e-4, rtol=1e-4), "mismatch vs JAX reference"
    print("KERNEL_OK")
</pallas_src>

<mosaic_0001>
module attributes {stable_mosaic.version = 11 : i64} {
  func.func @_conv_bypass_kernel(%arg0: i32, %arg1: memref<32x256xf32, #tpu.memory_space<vmem>>, %arg2: memref<128x32xf32, #tpu.memory_space<vmem>>, %arg3: memref<128x1xf32, #tpu.memory_space<vmem>>, %arg4: memref<384x128xf32, #tpu.memory_space<vmem>>, %arg5: memref<1xf32, #tpu.memory_space<smem>>, %arg6: memref<32x128xf32, #tpu.memory_space<vmem>>, %arg7: memref<32x1xf32, #tpu.memory_space<vmem>>, %arg8: memref<1x256xf32, #tpu.memory_space<vmem>>, %arg9: memref<1x256xf32, #tpu.memory_space<vmem>>, %arg10: memref<32x256xf32, #tpu.memory_space<vmem>>) attributes {dimension_semantics = [#tpu.dimension_semantics<parallel>], iteration_bounds = array<i64: 1>, scalar_prefetch = 0 : i64, scratch_operands = 0 : i64, tpu.core_type = #tpu.core_type<tc>, window_params = [{transform_indices = @transform_0, window_bounds = array<i64: 32, 256>}, {pipeline_mode = #tpu.pipeline_mode<synchronous>, transform_indices = @transform_1, window_bounds = array<i64: 128, 32>}, {pipeline_mode = #tpu.pipeline_mode<synchronous>, transform_indices = @transform_2, window_bounds = array<i64: 128, 1>}, {pipeline_mode = #tpu.pipeline_mode<synchronous>, transform_indices = @transform_3, window_bounds = array<i64: 384, 128>}, {transform_indices = @transform_4, window_bounds = array<i64: 1>}, {pipeline_mode = #tpu.pipeline_mode<synchronous>, transform_indices = @transform_5, window_bounds = array<i64: 32, 128>}, {pipeline_mode = #tpu.pipeline_mode<synchronous>, transform_indices = @transform_6, window_bounds = array<i64: 32, 1>}, {pipeline_mode = #tpu.pipeline_mode<synchronous>, transform_indices = @transform_7, window_bounds = array<i64: 1, 256>}, {pipeline_mode = #tpu.pipeline_mode<synchronous>, transform_indices = @transform_8, window_bounds = array<i64: 1, 256>}, {transform_indices = @transform_9, window_bounds = array<i64: 32, 256>}]} {
    %c0 = arith.constant 0 : index
    %c0_0 = arith.constant 0 : index
    %0 = vector.load %arg1[%c0, %c0_0] : memref<32x256xf32, #tpu.memory_space<vmem>>, vector<32x256xf32>
    %c0_1 = arith.constant 0 : index
    %c0_2 = arith.constant 0 : index
    %1 = vector.load %arg2[%c0_1, %c0_2] : memref<128x32xf32, #tpu.memory_space<vmem>>, vector<128x32xf32>
    %cst = arith.constant dense<0.000000e+00> : vector<128x256xf32>
    %2 = tpu.matmul %1, %0, %cst {dimension_numbers = #tpu.dot_dimension_numbers<[1], [0], [0], [1], [0, 0, 1, 1], [], []>} : vector<128x32xf32>, vector<32x256xf32>, vector<128x256xf32> -> vector<128x256xf32>
    %c0_3 = arith.constant 0 : index
    %c0_4 = arith.constant 0 : index
    %3 = vector.load %arg3[%c0_3, %c0_4] : memref<128x1xf32, #tpu.memory_space<vmem>>, vector<128x1xf32>
    %4 = vector.broadcast %3 : vector<128x1xf32> to vector<128x256xf32>
    %5 = arith.addf %2, %4 : vector<128x256xf32>
    %cst_5 = arith.constant 0.636619746 : f32
    %6 = math.sqrt %cst_5 : f32
    %cst_6 = arith.constant 5.000000e-01 : f32
    %7 = vector.broadcast %cst_6 : f32 to vector<128x256xf32>
    %8 = arith.mulf %7, %5 : vector<128x256xf32>
    %cst_7 = arith.constant 4.471500e-02 : f32
    %9 = vector.broadcast %cst_7 : f32 to vector<128x256xf32>
    %10 = arith.mulf %9, %5 : vector<128x256xf32>
    %11 = arith.mulf %10, %5 : vector<128x256xf32>
    %12 = arith.mulf %11, %5 : vector<128x256xf32>
    %13 = arith.addf %5, %12 : vector<128x256xf32>
    %14 = vector.broadcast %6 : f32 to vector<128x256xf32>
    %15 = arith.mulf %14, %13 : vector<128x256xf32>
    %16 = math.tanh %15 : vector<128x256xf32>
    %cst_8 = arith.constant 1.000000e+00 : f32
    %17 = vector.broadcast %cst_8 : f32 to vector<128x256xf32>
    %18 = arith.addf %17, %16 : vector<128x256xf32>
    %19 = arith.mulf %8, %18 : vector<128x256xf32>
    %c0_9 = arith.constant 0 : index
    %c0_10 = arith.constant 0 : index
    %20 = vector.load %arg4[%c0_9, %c0_10] : memref<384x128xf32, #tpu.memory_space<vmem>>, vector<384x128xf32>
    %cst_11 = arith.constant dense<0.000000e+00> : vector<384x256xf32>
    %21 = tpu.matmul %20, %19, %cst_11 {dimension_numbers = #tpu.dot_dimension_numbers<[1], [0], [0], [1], [0, 0, 1, 1], [], []>} : vector<384x128xf32>, vector<128x256xf32>, vector<384x256xf32> -> vector<384x256xf32>
    %22 = vector.extract_strided_slice %21 {offsets = [0, 0], sizes = [128, 256], strides = [1, 1]} : vector<384x256xf32> to vector<128x256xf32>
    %23 = vector.extract_strided_slice %21 {offsets = [128, 0], sizes = [128, 256], strides = [1, 1]} : vector<384x256xf32> to vector<128x256xf32>
    %24 = vector.extract_strided_slice %21 {offsets = [256, 0], sizes = [128, 256], strides = [1, 1]} : vector<384x256xf32> to vector<128x256xf32>
    %c0_12 = arith.constant 0 : index
    %c0_13 = arith.constant 0 : index
    %25 = vector.load %arg8[%c0_12, %c0_13] : memref<1x256xf32, #tpu.memory_space<vmem>>, vector<1x256xf32>
    %c1_i32 = arith.constant 1 : i32
    %26 = tpu.dynamic_rotate %22 by %c1_i32 dim 1 : vector<128x256xf32>, i32 -> vector<128x256xf32>
    %27 = vector.broadcast %25 : vector<1x256xf32> to vector<128x256xf32>
    %28 = arith.mulf %27, %26 : vector<128x256xf32>
    %c0_14 = arith.constant 0 : index
    %c0_15 = arith.constant 0 : index
    %29 = vector.load %arg9[%c0_14, %c0_15] : memref<1x256xf32, #tpu.memory_space<vmem>>, vector<1x256xf32>
    %c255_i32 = arith.constant 255 : i32
    %30 = tpu.dynamic_rotate %24 by %c255_i32 dim 1 : vector<128x256xf32>, i32 -> vector<128x256xf32>
    %31 = vector.broadcast %29 : vector<1x256xf32> to vector<128x256xf32>
    %32 = arith.mulf %31, %30 : vector<128x256xf32>
    %33 = arith.addf %23, %28 : vector<128x256xf32>
    %34 = arith.addf %33, %32 : vector<128x256xf32>
    %c0_16 = arith.constant 0 : index
    %35 = memref.load %arg5[%c0_16] : memref<1xf32, #tpu.memory_space<smem>>
    %36 = vector.broadcast %35 : f32 to vector<128x256xf32>
    %37 = arith.addf %34, %36 : vector<128x256xf32>
    %cst_17 = arith.constant 0.636619746 : f32
    %38 = math.sqrt %cst_17 : f32
    %cst_18 = arith.constant 5.000000e-01 : f32
    %39 = vector.broadcast %cst_18 : f32 to vector<128x256xf32>
    %40 = arith.mulf %39, %37 : vector<128x256xf32>
    %cst_19 = arith.constant 4.471500e-02 : f32
    %41 = vector.broadcast %cst_19 : f32 to vector<128x256xf32>
    %42 = arith.mulf %41, %37 : vector<128x256xf32>
    %43 = arith.mulf %42, %37 : vector<128x256xf32>
    %44 = arith.mulf %43, %37 : vector<128x256xf32>
    %45 = arith.addf %37, %44 : vector<128x256xf32>
    %46 = vector.broadcast %38 : f32 to vector<128x256xf32>
    %47 = arith.mulf %46, %45 : vector<128x256xf32>
    %48 = math.tanh %47 : vector<128x256xf32>
    %cst_20 = arith.constant 1.000000e+00 : f32
    %49 = vector.broadcast %cst_20 : f32 to vector<128x256xf32>
    %50 = arith.addf %49, %48 : vector<128x256xf32>
    %51 = arith.mulf %40, %50 : vector<128x256xf32>
    %c0_21 = arith.constant 0 : index
    %c0_22 = arith.constant 0 : index
    %52 = vector.load %arg6[%c0_21, %c0_22] : memref<32x128xf32, #tpu.memory_space<vmem>>, vector<32x128xf32>
    %cst_23 = arith.constant dense<0.000000e+00> : vector<32x256xf32>
    %53 = tpu.matmul %52, %51, %cst_23 {dimension_numbers = #tpu.dot_dimension_numbers<[1], [0], [0], [1], [0, 0, 1, 1], [], []>} : vector<32x128xf32>, vector<128x256xf32>, vector<32x256xf32> -> vector<32x256xf32>
    %c0_24 = arith.constant 0 : index
    %c0_25 = arith.constant 0 : index
    %54 = vector.load %arg7[%c0_24, %c0_25] : memref<32x1xf32, #tpu.memory_space<vmem>>, vector<32x1xf32>
    %55 = vector.broadcast %54 : vector<32x1xf32> to vector<32x256xf32>
    %56 = arith.addf %53, %55 : vector<32x256xf32>
    %57 = arith.addf %0, %56 : vector<32x256xf32>
    %c0_26 = arith.constant 0 : index
    %c0_27 = arith.constant 0 : index
    %58 = vector.load %arg10[%c0_26, %c0_27] : memref<32x256xf32, #tpu.memory_space<vmem>>, vector<32x256xf32>
    tpu.vector_store %arg10[%c0_26, %c0_27], %57 {strides = array<i32>} : memref<32x256xf32, #tpu.memory_space<vmem>>, vector<32x256xf32>,
    return
  }
  func.func @transform_0(%arg0: i32) -> (i32, i32) {
    %c0_i32 = arith.constant 0 : i32
    %c0_i32_0 = arith.constant 0 : i32
    return %c0_i32, %arg0 : i32, i32
  }
  func.func @transform_1(%arg0: i32) -> (i32, i32) {
    %c0_i32 = arith.constant 0 : i32
    %c0_i32_0 = arith.constant 0 : i32
    %c0_i32_1 = arith.constant 0 : i32
    return %c0_i32, %c0_i32_0 : i32, i32
  }
  func.func @transform_2(%arg0: i32) -> (i32, i32) {
    %c0_i32 = arith.constant 0 : i32
    %c0_i32_0 = arith.constant 0 : i32
    %c0_i32_1 = arith.constant 0 : i32
    return %c0_i32, %c0_i32_0 : i32, i32
  }
  func.func @transform_3(%arg0: i32) -> (i32, i32) {
    %c0_i32 = arith.constant 0 : i32
    %c0_i32_0 = arith.constant 0 : i32
    %c0_i32_1 = arith.constant 0 : i32
    return %c0_i32, %c0_i32_0 : i32, i32
  }
  func.func @transform_4(%arg0: i32) -> i32 {
    %c0_i32 = arith.constant 0 : i32
    %c0_i32_0 = arith.constant 0 : i32
    return %c0_i32 : i32
  }
  func.func @transform_5(%arg0: i32) -> (i32, i32) {
    %c0_i32 = arith.constant 0 : i32
    %c0_i32_0 = arith.constant 0 : i32
    %c0_i32_1 = arith.constant 0 : i32
    return %c0_i32, %c0_i32_0 : i32, i32
  }
  func.func @transform_6(%arg0: i32) -> (i32, i32) {
    %c0_i32 = arith.constant 0 : i32
    %c0_i32_0 = arith.constant 0 : i32
    %c0_i32_1 = arith.constant 0 : i32
    return %c0_i32, %c0_i32_0 : i32, i32
  }
  func.func @transform_7(%arg0: i32) -> (i32, i32) {
    %c0_i32 = arith.constant 0 : i32
    %c0_i32_0 = arith.constant 0 : i32
    %c0_i32_1 = arith.constant 0 : i32
    return %c0_i32, %c0_i32_0 : i32, i32
  }
  func.func @transform_8(%arg0: i32) -> (i32, i32) {
    %c0_i32 = arith.constant 0 : i32
    %c0_i32_0 = arith.constant 0 : i32
    %c0_i32_1 = arith.constant 0 : i32
    return %c0_i32, %c0_i32_0 : i32, i32
  }
  func.func @transform_9(%arg0: i32) -> (i32, i32) {
    %c0_i32 = arith.constant 0 : i32
    %c0_i32_0 = arith.constant 0 : i32
    return %c0_i32, %arg0 : i32, i32
  }
}

</mosaic_0001>

<bundles_post_ra>
// kernel: conv_bypass.1
= control target key start
LH: loop header
LB: loop body
LE: loop exit
PB: predicated region body
PF: predicated region fallthrough
CT: control target
= control target key end

     0   :  { %v1960_v0 = vmov 0   ;;  %vm153_vm0 = vcmask 261120   ;;  %s1961_s20 = smov 1   ;;  %s3656_s2 = inlined_call_operand.vmem [shape: f32[128,1], index: 2, kind: input, shape index: {}]   ;;  %s3657_s0 = inlined_call_operand.vmem [shape: f32[32,256], index: 0, kind: input, shape index: {}, may-alias: {0,9}]   ;;  %s3658_s1 = inlined_call_operand.vmem [shape: f32[128,32], index: 1, kind: input, shape index: {}]   ;;  %s3659_s3 = inlined_call_operand.vmem [shape: f32[384,128], index: 3, kind: input, shape index: {}]   ;;  %s3660_s7 = inlined_call_operand.vmem [shape: f32[1,256], index: 7, kind: input, shape index: {}]   ;;  %s3661_s8 = inlined_call_operand.vmem [shape: f32[1,256], index: 8, kind: input, shape index: {}]   ;;  %s3662_s6 = inlined_call_operand.vmem [shape: f32[32,1], index: 6, kind: input, shape index: {}]   ;;  %s3663_s4 = inlined_call_operand.<no memory space> [shape: f32[1], index: 4, kind: input, shape index: {}]   ;;  %s3664_s5 = inlined_call_operand.vmem [shape: f32[32,128], index: 5, kind: input, shape index: {}]   ;;  %s3665_s9 = inlined_call_operand.vmem [shape: f32[32,256], index: 9, kind: output, shape index: {}, may-alias: {0,9}]  }
   0x1   :  { %1821 = vset.pattern.permute.xlu0 %v1960_v0  ;;  %v72_v1 = vld [vmem:[%s3656_s2 + $0x78] sm:$0xff]  ;;  %v39_v2 = vld [vmem:[%s3657_s0 + $0x30] sm:$0xff]  ;;  %1822 = vset.pattern.permute.xlu1 %v1960_v0  ;;  %v70_v4 = vld [vmem:[%s3656_s2 + $0x68] sm:$0xff] }
   0x2   :  { %v40_v3 = vld [vmem:[%s3657_s0 + $0x38] sm:$0xff]  ;;  %150 = vperm.xlu0 %1821, %v72_v1   ;;  %214 = vmatpush.msra.mxu0 %v39_v2  ;;  %v37_v5 = vld [vmem:[%s3657_s0 + $0x20] sm:$0xff]  ;;  %v38_v6 = vld [vmem:[%s3657_s0 + $0x28] sm:$0xff] }
   0x3   :  { %279 = vmatpush.msra.mxu1 %v40_v3  ;;  %140 = vperm.xlu1 %1822, %v70_v4   ;;  %v35_v7 = vld [vmem:[%s3657_s0 + $0x10] sm:$0xff]  ;;  %v36_v8 = vld [vmem:[%s3657_s0 + $0x18] sm:$0xff]  ;;  %v33_v9 = vld [vmem:[%s3657_s0] sm:$0xff] }
   0x4   :  { %215 = vmatpush.msra.mxu0 %v37_v5  ;;  %1823 = vset.pattern.permute.xlu2 %v1960_v0  ;;  %v34_v10 = vld [vmem:[%s3657_s0 + $0x8] sm:$0xff]  ;;  %v41_v11 = vld [vmem:[%s3658_s1] sm:$0xff]  ;;  %v68_v12 = vld [vmem:[%s3656_s2 + $0x58] sm:$0xff] }
   0x5   :  { %280 = vmatpush.msra.mxu1 %v38_v6  ;;  %v71_v13 = vld [vmem:[%s3656_s2 + $0x70] sm:$0xff]  ;;  %130 = vperm.xlu2 %1823, %v68_v12   ;;  %v69_v14 = vld [vmem:[%s3656_s2 + $0x60] sm:$0xff]  ;;  %v42_v16 = vld [vmem:[%s3658_s1 + $0x8] sm:$0xff] }
   0x6   :  { %216 = vmatpush.msra.mxu0 %v35_v7  ;;  %v67_v15 = vld [vmem:[%s3656_s2 + $0x50] sm:$0xff]  ;;  %v66_v17 = vld [vmem:[%s3656_s2 + $0x48] sm:$0xff]  ;;  %v65_v18 = vld [vmem:[%s3656_s2 + $0x40] sm:$0xff] }
   0x7   :  { %281 = vmatpush.msra.mxu1 %v36_v8  ;;  %v64_v19 = vld [vmem:[%s3656_s2 + $0x38] sm:$0xff]  ;;  %v43_v20 = vld [vmem:[%s3658_s1 + $0x10] sm:$0xff]  ;;  %v62_v22 = vld [vmem:[%s3656_s2 + $0x28] sm:$0xff] }
   0x8   :  { %217 = vmatpush.msra.mxu0 %v33_v9  ;;  %v63_v21 = vld [vmem:[%s3656_s2 + $0x30] sm:$0xff]  ;;  %v61_v23 = vld [vmem:[%s3656_s2 + $0x20] sm:$0xff]  ;;  %v44_v24 = vld [vmem:[%s3658_s1 + $0x18] sm:$0xff] }
   0x9   :  { %282 = vmatpush.msra.mxu1 %v34_v10  ;;  %1754 = vmatmul.msk.f32.vlgmr.msra.gmra.mxu0 %vm153_vm0, %v41_v11  ;;  %v60_v25 = vld [vmem:[%s3656_s2 + $0x18] sm:$0xff]  ;;  %v59_v26 = vld [vmem:[%s3656_s2 + $0x10] sm:$0xff]  ;;  %v58_v27 = vld [vmem:[%s3656_s2 + $0x8] sm:$0xff] }
   0xa   :  { %1770 = vmatmul.msk.f32.vlgmr.msra.gmra.mxu1 %vm153_vm0, %v41_v11  ;;  %145 = vperm.xlu0 %1821, %v71_v13   ;;  %v45_v28 = vld [vmem:[%s3658_s1 + $0x20] sm:$0xff]  ;;  %v46_v30 = vld [vmem:[%s3658_s1 + $0x28] sm:$0xff]  ;;  %v47_v31 = vld [vmem:[%s3658_s1 + $0x30] sm:$0xff] }
   0xb   :  { %135 = vperm.xlu1 %1822, %v69_v14   ;;  %v57_v29 = vld [vmem:[%s3656_s2] sm:$0xff]  ;;  %v48_v32 = vld [vmem:[%s3658_s1 + $0x38] sm:$0xff]  ;;  %v50_v34 = vld [vmem:[%s3658_s1 + $0x48] sm:$0xff] }
   0xc   :  { %v49_v33 = vld [vmem:[%s3658_s1 + $0x40] sm:$0xff]  ;;  %v51_v35 = vld [vmem:[%s3658_s1 + $0x50] sm:$0xff]  ;;  %v52_v36 = vld [vmem:[%s3658_s1 + $0x58] sm:$0xff] }
   0xd   :  { %125 = vperm.xlu2 %1823, %v67_v15   ;;  %v53_v37 = vld [vmem:[%s3658_s1 + $0x60] sm:$0xff]  ;;  %v54_v38 = vld [vmem:[%s3658_s1 + $0x68] sm:$0xff]  ;;  %v55_v39 = vld [vmem:[%s3658_s1 + $0x70] sm:$0xff] }
   0xe   :  { %v56_v40 = vld [vmem:[%s3658_s1 + $0x78] sm:$0xff] }
  0x11   :  { %1755 = vmatmul.msk.f32.gmra.mxu0 %vm153_vm0, %v42_v16 }
  0x12   :  { %1771 = vmatmul.msk.f32.gmra.mxu1 %vm153_vm0, %v42_v16  ;;  %120 = vperm.xlu0 %1821, %v66_v17  }
  0x13   :  { %115 = vperm.xlu1 %1822, %v65_v18  }
  0x15   :  { %110 = vperm.xlu2 %1823, %v64_v19  }
  0x19   :  { %1756 = vmatmul.msk.f32.gmra.mxu0 %vm153_vm0, %v43_v20 }
  0x1a   :  { %1772 = vmatmul.msk.f32.gmra.mxu1 %vm153_vm0, %v43_v20  ;;  %105 = vperm.xlu0 %1821, %v63_v21  }
  0x1b   :  { %100 = vperm.xlu1 %1822, %v62_v22  }
  0x1d   :  { %95 = vperm.xlu2 %1823, %v61_v23  }
  0x21   :  { %1757 = vmatmul.msk.f32.gmra.mxu0 %vm153_vm0, %v44_v24 }
  0x22   :  { %1773 = vmatmul.msk.f32.gmra.mxu1 %vm153_vm0, %v44_v24  ;;  %90 = vperm.xlu0 %1821, %v60_v25  }
  0x23   :  { %85 = vperm.xlu1 %1822, %v59_v26  }
  0x25   :  { %80 = vperm.xlu2 %1823, %v58_v27  }
  0x29   :  { %1758 = vmatmul.msk.f32.gmra.mxu0 %vm153_vm0, %v45_v28 }
  0x2a   :  { %1774 = vmatmul.msk.f32.gmra.mxu1 %vm153_vm0, %v45_v28  ;;  %75 = vperm.xlu0 %1821, %v57_v29  }
  0x31   :  { %1759 = vmatmul.msk.f32.gmra.mxu0 %vm153_vm0, %v46_v30 }
  0x32   :  { %1775 = vmatmul.msk.f32.gmra.mxu1 %vm153_vm0, %v46_v30 }
  0x39   :  { %1760 = vmatmul.msk.f32.gmra.mxu0 %vm153_vm0, %v47_v31 }
  0x3a   :  { %1776 = vmatmul.msk.f32.gmra.mxu1 %vm153_vm0, %v47_v31 }
  0x41   :  { %1761 = vmatmul.msk.f32.gmra.mxu0 %vm153_vm0, %v48_v32 }
  0x42   :  { %1777 = vmatmul.msk.f32.gmra.mxu1 %vm153_vm0, %v48_v32 }
  0x49   :  { %1762 = vmatmul.msk.f32.gmra.mxu0 %vm153_vm0, %v49_v33 }
  0x4a   :  { %1778 = vmatmul.msk.f32.gmra.mxu1 %vm153_vm0, %v49_v33 }
  0x51   :  { %1763 = vmatmul.msk.f32.gmra.mxu0 %vm153_vm0, %v50_v34 }
  0x52   :  { %1779 = vmatmul.msk.f32.gmra.mxu1 %vm153_vm0, %v50_v34 }
  0x59   :  { %1764 = vmatmul.msk.f32.gmra.mxu0 %vm153_vm0, %v51_v35 }
  0x5a   :  { %1780 = vmatmul.msk.f32.gmra.mxu1 %vm153_vm0, %v51_v35 }
  0x5f   :  { %v2167_v52 = vpop.permute.xlu2 %130 }
  0x61   :  { %1765 = vmatmul.msk.f32.gmra.mxu0 %vm153_vm0, %v52_v36 }
  0x62   :  { %1781 = vmatmul.msk.f32.gmra.mxu1 %vm153_vm0, %v52_v36 }
  0x67   :  { %v2173_v57 = vpop.permute.xlu2 %125 }
  0x69   :  { %1766 = vmatmul.msk.f32.gmra.mxu0 %vm153_vm0, %v53_v37 }
  0x6a   :  { %1782 = vmatmul.msk.f32.gmra.mxu1 %vm153_vm0, %v53_v37 }
  0x6f   :  { %v2183_v0 = vpop.permute.xlu2 %110 }
  0x71   :  { %1767 = vmatmul.msk.f32.gmra.mxu0 %vm153_vm0, %v54_v38 }
  0x72   :  { %1783 = vmatmul.msk.f32.gmra.mxu1 %vm153_vm0, %v54_v38 }
  0x74   :  { %v2169_v53 = vpop.permute.xlu0 %150 }
  0x75   :  { %v2165_v51 = vpop.permute.xlu1 %140 }
  0x77   :  { %v96_v5 = vpop.permute.xlu2 %95 }
  0x79   :  { %1768 = vmatmul.msk.f32.gmra.mxu0 %vm153_vm0, %v55_v39 }
  0x7a   :  { %1784 = vmatmul.msk.f32.gmra.mxu1 %vm153_vm0, %v55_v39 }
  0x7c   :  { %v2175_v58 = vpop.permute.xlu0 %145 }
  0x7d   :  { %v2171_v56 = vpop.permute.xlu1 %135 }
  0x7f   :  { %v81_v10 = vpop.permute.xlu2 %80 }
  0x81   :  { %1769 = vmatmul.msk.f32.gmra.mxu0 %vm153_vm0, %v56_v40 }
  0x82   :  { %1785 = vmatmul.msk.f32.gmra.mxu1 %vm153_vm0, %v56_v40 }
  0x84   :  { %v2185_v1 = vpop.permute.xlu0 %120 }
  0x85   :  { %v2177_v61 = vpop.permute.xlu1 %115 }
  0x86   :  { %v219_v41 = vpop.f32.mrf.mxu0 }
  0x87   :  { %v284_v42 = vpop.f32.mrf.mxu1 }
  0x8c   :  { %v106_v6 = vpop.permute.xlu0 %105 }
  0x8d   :  { %v101_v4 = vpop.permute.xlu1 %100 }
  0x8e   :  { %v222_v43 = vpop.f32.mrf.mxu0 }
  0x8f   :  { %v287_v44 = vpop.f32.mrf.mxu1  ;;  %v2201_v15 = vadd.f32 %v222_v43, %v81_v10 }
  0x90   :  { %v2205_v17 = vadd.f32 %v287_v44, %v81_v10 }
  0x91   :  { %3682 = vst [vmem:[#allocation5_spill] sm:$0xff] %v2201_v15  ;;  %v366_v20 = vmul.f32 0.044715, %v2201_v15 }
  0x92   :  { %3683 = vst [vmem:[#allocation6_spill] sm:$0xff] %v2205_v17  ;;  %v367_v21 = vmul.f32 0.044715, %v2205_v17 }
  0x93   :  { %v398_v29 = vmul.f32 %v366_v20, %v2201_v15 }
  0x94   :  { %v91_v11 = vpop.permute.xlu0 %90  ;;  %v399_v31 = vmul.f32 %v367_v21, %v2205_v17 }
  0x95   :  { %v86_v9 = vpop.permute.xlu1 %85  ;;  %v430_v38 = vmul.f32 %v398_v29, %v2201_v15 }
  0x96   :  { %v225_v45 = vpop.f32.mrf.mxu0  ;;  %v431_v43 = vmul.f32 %v399_v31, %v2205_v17 }
  0x97   :  { %v290_v46 = vpop.f32.mrf.mxu1  ;;  %v2195_v12 = vadd.f32 %v225_v45, %v86_v9 }
  0x98   :  { %v2197_v13 = vadd.f32 %v290_v46, %v86_v9 }
  0x99   :  { %3680 = vst [vmem:[#allocation3_spill] sm:$0xff] %v2195_v12  ;;  %v368_v18 = vmul.f32 0.044715, %v2195_v12 }
  0x9a   :  { %3681 = vst [vmem:[#allocation4_spill] sm:$0xff] %v2197_v13  ;;  %v369_v19 = vmul.f32 0.044715, %v2197_v13 }
  0x9b   :  { %v400_v22 = vmul.f32 %v368_v18, %v2195_v12 }
  0x9c   :  { %v76_v23 = vpop.permute.xlu0 %75  ;;  %v401_v25 = vmul.f32 %v369_v19, %v2197_v13 }
  0x9d   :  { %v2225_v32 = vadd.f32 %v219_v41, %v76_v23  ;;  %v432_v33 = vmul.f32 %v400_v22, %v2195_v12  ;;  %v2228_v34 = vadd.f32 %v284_v42, %v76_v23 }
  0x9e   :  { %v228_v47 = vpop.f32.mrf.mxu0  ;;  %v433_v35 = vmul.f32 %v401_v25, %v2197_v13 }
  0x9f   :  { %v293_v48 = vpop.f32.mrf.mxu1  ;;  %v2215_v26 = vadd.f32 %v228_v47, %v91_v11  ;;  %3687 = vst [vmem:[#allocation10_spill] sm:$0xff] %v2225_v32  ;;  %v464_v42 = vadd.f32 %v432_v33, %v2195_v12  ;;  %v364_v45 = vmul.f32 0.044715, %v2225_v32 }
  0xa0   :  { %v2217_v27 = vadd.f32 %v293_v48, %v91_v11  ;;  %3688 = vst [vmem:[#allocation11_spill] sm:$0xff] %v2228_v34 }
  0xa1   :  { %3684 = vst [vmem:[#allocation7_spill] sm:$0xff] %v2215_v26  ;;  %v370_v36 = vmul.f32 0.044715, %v2215_v26  ;;  %v496_v11 = vmul.f32 0.7978845, %v464_v42  ;;  %v396_v18 = vmul.f32 %v364_v45, %v2225_v32 }
  0xa2   :  { %3685 = vst [vmem:[#allocation8_spill] sm:$0xff] %v2217_v27  ;;  %v371_v37 = vmul.f32 0.044715, %v2217_v27 }
  0xa3   :  { %1824 = vtanh.f32 %v496_v11 }
  0xa6   :  { %v231_v49 = vpop.f32.mrf.mxu0 }
  0xa7   :  { %v296_v50 = vpop.f32.mrf.mxu1  ;;  %v2222_v30 = vadd.f32 %v231_v49, %v96_v5  ;;  %v465_v49 = vadd.f32 %v433_v35, %v2197_v13 }
  0xa8   :  { %v2234_v39 = vadd.f32 %v296_v50, %v96_v5  ;;  %v365_v50 = vmul.f32 0.044715, %v2228_v34 }
  0xa9   :  { %3686 = vst [vmem:[#allocation9_spill] sm:$0xff] %v2222_v30  ;;  %v372_v40 = vmul.f32 0.044715, %v2222_v30  ;;  %v497_v21 = vmul.f32 0.7978845, %v465_v49 }
  0xaa   :  { %3689 = vst [vmem:[#allocation12_spill] sm:$0xff] %v2234_v39  ;;  %v397_v22 = vmul.f32 %v365_v50, %v2228_v34 }
  0xab   :  { %v404_v9 = vmul.f32 %v372_v40, %v2222_v30  ;;  %v428_v40 = vmul.f32 %v396_v18, %v2225_v32  ;;  %1826 = vtanh.f32 %v497_v21 }
  0xad   :  { %v436_v35 = vmul.f32 %v404_v9, %v2222_v30  ;;  %v2305_v18 = vadd.f32 %v428_v40, %v2225_v32 }
  0xae   :  { %v234_v54 = vpop.f32.mrf.mxu0 }
  0xaf   :  { %v299_v55 = vpop.f32.mrf.mxu1  ;;  %v2238_v41 = vadd.f32 %v234_v54, %v101_v4  ;;  %v402_v54 = vmul.f32 %v370_v36, %v2215_v26 }
  0xb0   :  { %v2240_v44 = vadd.f32 %v299_v55, %v101_v4  ;;  %v403_v55 = vmul.f32 %v371_v37, %v2217_v27  ;;  %v462_v4 = vadd.f32 %v430_v38, %v2201_v15 }
  0xb1   :  { %v434_v25 = vmul.f32 %v402_v54, %v2215_v26 }
  0xb2   :  { %v375_v10 = vmul.f32 0.044715, %v2240_v44  ;;  %v435_v29 = vmul.f32 %v403_v55, %v2217_v27  ;;  %v2270_v31 = vmul.f32 0.7978845, %v462_v4 }
  0xb3   :  { %v466_v54 = vadd.f32 %v434_v25, %v2215_v26 }
  0xb4   :  { %v467_v55 = vadd.f32 %v435_v29, %v2217_v27 }
  0xb5   :  { %v2320_v29 = vmul.f32 0.7978845, %v466_v54 }
  0xb6   :  { %v237_v59 = vpop.f32.mrf.mxu0 }
  0xb7   :  { %v302_v60 = vpop.f32.mrf.mxu1  ;;  %v2244_v46 = vadd.f32 %v237_v59, %v106_v6  ;;  %v373_v59 = vmul.f32 0.044715, %v2234_v39 }
  0xb8   :  { %v2246_v47 = vadd.f32 %v302_v60, %v106_v6  ;;  %v463_v60 = vadd.f32 %v431_v43, %v2205_v17  ;;  %v374_v6 = vmul.f32 0.044715, %v2238_v41 }
  0xb9   :  { %v376_v19 = vmul.f32 0.044715, %v2244_v46  ;;  %v405_v36 = vmul.f32 %v373_v59, %v2234_v39  ;;  %v468_v59 = vadd.f32 %v436_v35, %v2222_v30  ;;  %v2322_v35 = vmul.f32 0.7978845, %v467_v55 }
  0xba   :  { %v377_v20 = vmul.f32 0.044715, %v2246_v47  ;;  %v2278_v37 = vmul.f32 0.7978845, %v463_v60  ;;  %v406_v38 = vmul.f32 %v374_v6, %v2238_v41 }
  0xbb   :  { %v408_v42 = vmul.f32 %v376_v19, %v2244_v46  ;;  %v437_v60 = vmul.f32 %v405_v36, %v2234_v39 }
  0xbc   :  { %v409_v45 = vmul.f32 %v377_v20, %v2246_v47 }
  0xbd   :  { %v440_v19 = vmul.f32 %v408_v42, %v2244_v46 }
  0xbe   :  { %v2179_v62 = vpop.f32.mrf.mxu0  ;;  %v441_v20 = vmul.f32 %v409_v45, %v2246_v47 }
  0xbf   :  { %v2181_v63 = vpop.f32.mrf.mxu1  ;;  %v2266_v23 = vadd.f32 %v2179_v62, %v2183_v0  ;;  %v407_v62 = vmul.f32 %v375_v10, %v2240_v44  ;;  %v438_v10 = vmul.f32 %v406_v38, %v2238_v41  ;;  %v2328_v38 = vmul.f32 0.7978845, %v468_v59 }
  0xc0   :  { %v2274_v33 = vadd.f32 %v2181_v63, %v2183_v0  ;;  %v429_v63 = vmul.f32 %v397_v22, %v2228_v34  ;;  %v2349_v54 = vadd.f32 %v440_v19, %v2244_v46 }
  0xc1   :  { %v378_v50 = vmul.f32 0.044715, %v2266_v23  ;;  %v439_v11 = vmul.f32 %v407_v62, %v2240_v44  ;;  %v2331_v62 = vadd.f32 %v437_v60, %v2234_v39  ;;  %v2338_v42 = vadd.f32 %v438_v10, %v2238_v41 }
  0xc2   :  { %v379_v9 = vmul.f32 0.044715, %v2274_v33  ;;  %v2314_v21 = vadd.f32 %v429_v63, %v2228_v34 }
  0xc3   :  { %v410_v25 = vmul.f32 %v378_v50, %v2266_v23  ;;  %v2341_v45 = vadd.f32 %v439_v11, %v2240_v44 }
  0xc6   :  { %v2187_v2 = vpop.f32.mrf.mxu0 }
  0xc7   :  { %v2189_v3 = vpop.f32.mrf.mxu1  ;;  %v2300_v6 = vadd.f32 %v2187_v2, %v2177_v61  ;;  %v2316_v2 = vpop.eup %1824 }
  0xc8   :  { %3690 = vst [vmem:[#allocation13_spill] sm:$0xff] %v2316_v2  ;;  %v2324_v36 = vpop.eup %1826 }
  0xc9   :  { %3691 = vst [vmem:[#allocation14_spill] sm:$0xff] %v2324_v36 }
  0xce   :  { %v2191_v7 = vpop.f32.mrf.mxu0 }
  0xcf   :  { %v2193_v8 = vpop.f32.mrf.mxu1 }
  0xd6   :  { %v2199_v14 = vpop.f32.mrf.mxu0 }
  0xd7   :  { %v2203_v16 = vpop.f32.mrf.mxu1  ;;  %v2378_v19 = vadd.f32 %v2199_v14, %v2173_v57  ;;  %v2392_v14 = vadd.f32 %v2191_v7, %v2185_v1 }
  0xde   :  { %v2212_v24 = vpop.f32.mrf.mxu0 }
  0xdf   :  { %v2219_v28 = vpop.f32.mrf.mxu1  ;;  %v2356_v55 = vadd.f32 %v2212_v24, %v2167_v52 }
  0xe0   :  { %v2367_v60 = vadd.f32 %v2219_v28, %v2167_v52  ;;  %v2385_v52 = vadd.f32 %v2203_v16, %v2173_v57  ;;  %v2399_v57 = vadd.f32 %v2193_v8, %v2185_v1 }
  0xe2   :  { %v385_v8 = vmul.f32 0.044715, %v2385_v52  ;;  %v383_v12 = vmul.f32 0.044715, %v2399_v57 }
  0xe4   :  { %v415_v39 = vmul.f32 %v383_v12, %v2399_v57 }
  0xe6   :  { %v255_v48 = vpop.f32.mrf.mxu0 }
  0xe7   :  { %v2250_v5 = vpop.f32.mrf.mxu1  ;;  %v2334_v40 = vadd.f32 %v255_v48, %v2171_v56  ;;  %v2352_v48 = vadd.f32 %v441_v20, %v2246_v47 }
  0xe8   :  { %v2345_v63 = vadd.f32 %v2250_v5, %v2171_v56  ;;  %v2363_v5 = vmul.f32 %v410_v25, %v2266_v23 }
  0xea   :  { %v389_v28 = vmul.f32 0.044715, %v2345_v63 }
  0xec   :  { %v421_v1 = vmul.f32 %v389_v28, %v2345_v63 }
  0xee   :  { %v258_v43 = vpop.f32.mrf.mxu0 }
  0xef   :  { %v2287_v0 = vadd.f32 %v258_v43, %v2165_v51  ;;  %v323_v49 = vpop.f32.mrf.mxu1  ;;  %v380_v43 = vmul.f32 0.044715, %v2300_v6 }
  0xf0   :  { %v2293_v4 = vadd.f32 %v323_v49, %v2165_v51  ;;  %v2309_v51 = vadd.f32 %v2189_v3, %v2177_v61  ;;  %v411_v3 = vmul.f32 %v379_v9, %v2274_v33 }
  0xf1   :  { %v390_v22 = vmul.f32 0.044715, %v2287_v0  ;;  %v412_v25 = vmul.f32 %v380_v43, %v2300_v6  ;;  %v386_v43 = vmul.f32 0.044715, %v2356_v55 }
  0xf2   :  { %v391_v61 = vmul.f32 0.044715, %v2293_v4  ;;  %v381_v50 = vmul.f32 0.044715, %v2309_v51  ;;  %v2374_v24 = vmul.f32 %v411_v3, %v2274_v33 }
  0xf3   :  { %v422_v56 = vmul.f32 %v390_v22, %v2287_v0  ;;  %v388_v22 = vmul.f32 0.044715, %v2334_v40  ;;  %v418_v15 = vmul.f32 %v386_v43, %v2356_v55 }
  0xf4   :  { %v423_v11 = vmul.f32 %v391_v61, %v2293_v4  ;;  %v413_v61 = vmul.f32 %v381_v50, %v2309_v51  ;;  %v387_v50 = vmul.f32 0.044715, %v2367_v60 }
  0xf5   :  { %v420_v7 = vmul.f32 %v388_v22, %v2334_v40  ;;  %v450_v2 = vmul.f32 %v418_v15, %v2356_v55 }
  0xf6   :  { %v261_v49 = vpop.f32.mrf.mxu0  ;;  %v419_v28 = vmul.f32 %v387_v50, %v2367_v60 }
  0xf7   :  { %v2359_v9 = vadd.f32 %v261_v49, %v2175_v58  ;;  %v326_v59 = vpop.f32.mrf.mxu1  ;;  %v454_v49 = vmul.f32 %v422_v56, %v2287_v0  ;;  %v2408_v56 = vmul.f32 %v412_v25, %v2300_v6  ;;  %v382_v25 = vmul.f32 0.044715, %v2392_v14 }
  0xf8   :  { %v2370_v10 = vadd.f32 %v326_v59, %v2175_v58  ;;  %v455_v59 = vmul.f32 %v423_v11, %v2293_v4  ;;  %v445_v11 = vmul.f32 %v413_v61, %v2309_v51  ;;  %v452_v36 = vmul.f32 %v420_v7, %v2334_v40 }
  0xf9   :  { %v392_v20 = vmul.f32 0.044715, %v2359_v9  ;;  %v486_v22 = vadd.f32 %v454_v49, %v2287_v0  ;;  %v414_v26 = vmul.f32 %v382_v25, %v2392_v14 }
  0xfa   :  { %v393_v58 = vmul.f32 0.044715, %v2370_v10 }
  0xfb   :  { %v424_v3 = vmul.f32 %v392_v20, %v2359_v9  ;;  %v384_v20 = vmul.f32 0.044715, %v2378_v19  ;;  %v446_v12 = vmul.f32 %v414_v26, %v2392_v14 }
  0xfc   :  { %v425_v16 = vmul.f32 %v393_v58, %v2370_v10 }
  0xfd   :  { %v456_v34 = vmul.f32 %v424_v3, %v2359_v9  ;;  %v416_v49 = vmul.f32 %v384_v20, %v2378_v19  ;;  %v451_v20 = vmul.f32 %v419_v28, %v2367_v60  ;;  %v482_v28 = vadd.f32 %v450_v2, %v2356_v55 }
  0xfe   :  { %v264_v32 = vpop.f32.mrf.mxu0  ;;  %v457_v17 = vmul.f32 %v425_v16, %v2370_v10  ;;  %v487_v16 = vadd.f32 %v455_v59, %v2293_v4  ;;  %v417_v59 = vmul.f32 %v385_v8, %v2385_v52  ;;  %v478_v26 = vadd.f32 %v446_v12, %v2392_v14 }
  0xff   :  { %v2415_v58 = vadd.f32 %v264_v32, %v2169_v53  ;;  %v329_v3 = vpop.f32.mrf.mxu1  ;;  %v488_v32 = vadd.f32 %v456_v34, %v2359_v9  ;;  %v448_v8 = vmul.f32 %v416_v49, %v2378_v19  ;;  %v447_v49 = vmul.f32 %v415_v39, %v2399_v57 }
 0x100   :  { %v2421_v13 = vadd.f32 %v329_v3, %v2169_v53  ;;  %v489_v27 = vadd.f32 %v457_v17, %v2370_v10  ;;  %v453_v53 = vmul.f32 %v421_v1, %v2345_v63  ;;  %v518_v3 = vmul.f32 0.7978845, %v486_v22 }
 0x101   :  { %v394_v61 = vmul.f32 0.044715, %v2415_v58  ;;  %v519_v7 = vmul.f32 0.7978845, %v487_v16  ;;  %v520_v30 = vmul.f32 0.7978845, %v488_v32  ;;  %v484_v1 = vadd.f32 %v452_v36, %v2334_v40 }
 0x102   :  { %v395_v43 = vmul.f32 0.044715, %v2421_v13  ;;  %v485_v15 = vadd.f32 %v453_v53, %v2345_v63  ;;  %v449_v25 = vmul.f32 %v417_v59, %v2385_v52  ;;  %1828 = vtanh.f32 %v518_v3 }
 0x103   :  { %v426_v50 = vmul.f32 %v394_v61, %v2415_v58  ;;  %v521_v61 = vmul.f32 0.7978845, %v489_v27  ;;  %1830 = vtanh.f32 %v519_v7  ;;  %v483_v36 = vadd.f32 %v451_v20, %v2367_v60 }
 0x104   :  { %v427_v34 = vmul.f32 %v395_v43, %v2421_v13  ;;  %1832 = vtanh.f32 %v520_v30  ;;  %v516_v27 = vmul.f32 0.7978845, %v484_v1  ;;  %v480_v53 = vadd.f32 %v448_v8, %v2378_v19 }
 0x105   :  { %v458_v17 = vmul.f32 %v426_v50, %v2415_v58  ;;  %1834 = vtanh.f32 %v521_v61  ;;  %v517_v50 = vmul.f32 0.7978845, %v485_v15  ;;  %v481_v3 = vadd.f32 %v449_v25, %v2385_v52 }
 0x106   :  { %v459_v22 = vmul.f32 %v427_v34, %v2421_v13  ;;  %v514_v2 = vmul.f32 0.7978845, %v482_v28  ;;  %v474_v34 = vadd.f32 %v2363_v5, %v2266_v23  ;;  %v515_v7 = vmul.f32 0.7978845, %v483_v36 }
 0x107   :  { %v490_v16 = vadd.f32 %v458_v17, %v2415_v58  ;;  %v479_v39 = vadd.f32 %v447_v49, %v2399_v57  ;;  %v475_v30 = vadd.f32 %v2374_v24, %v2274_v33  ;;  %v512_v17 = vmul.f32 0.7978845, %v480_v53 }
 0x108   :  { %v491_v32 = vadd.f32 %v459_v22, %v2421_v13  ;;  %v1829_v20 = vpop.eup %1828  ;;  %v476_v1 = vadd.f32 %v2408_v56, %v2300_v6  ;;  %v477_v8 = vadd.f32 %v445_v11, %v2309_v51  ;;  %v513_v61 = vmul.f32 0.7978845, %v481_v3 }
 0x109   :  { %v522_v43 = vmul.f32 0.7978845, %v490_v16  ;;  %v1831_v22 = vpop.eup %1830  ;;  %v2464_v5 = vmul.f32 0.7978845, %v2338_v42  ;;  %v2467_v15 = vmul.f32 0.7978845, %v2331_v62 }
 0x10a   :  { %v523_v59 = vmul.f32 0.7978845, %v491_v32  ;;  %v1833_v25 = vpop.eup %1832  ;;  %v510_v24 = vmul.f32 0.7978845, %v478_v26  ;;  %v504_v16 = vmul.f32 0.7978845, %v2349_v54 }
 0x10b   :  { %1836 = vtanh.f32 %v522_v43  ;;  %v2471_v28 = vmul.f32 0.7978845, %v2341_v45  ;;  %v1835_v56 = vpop.eup %1834  ;;  %v511_v11 = vmul.f32 0.7978845, %v479_v39  ;;  %v506_v12 = vmul.f32 0.7978845, %v474_v34 }
 0x10c   :  { %1838 = vtanh.f32 %v523_v59  ;;  %v505_v32 = vmul.f32 0.7978845, %v2352_v48  ;;  %v508_v42 = vmul.f32 0.7978845, %v476_v1  ;;  %v509_v49 = vmul.f32 0.7978845, %v477_v8 }
 0x10d   :  { %1840 = vtanh.f32 %v516_v27  ;;  %v507_v62 = vmul.f32 0.7978845, %v475_v30  ;;  %v362_v27 = vmul.f32 0.5, %v2415_v58  ;;  %v584_v59 = vadd.f32 1.0, %v1833_v25 }
 0x10e   :  { %1842 = vtanh.f32 %v517_v50  ;;  %v363_v45 = vmul.f32 0.5, %v2421_v13  ;;  %v585_v3 = vadd.f32 1.0, %v1835_v56  ;;  %v360_v48 = vmul.f32 0.5, %v2359_v9 }
 0x10f   :  { %1844 = vtanh.f32 %v514_v2  ;;  %v582_v34 = vadd.f32 1.0, %v1829_v20  ;;  %v361_v30 = vmul.f32 0.5, %v2370_v10  ;;  %v583_v58 = vadd.f32 1.0, %v1831_v22 }
 0x110   :  { %1846 = vtanh.f32 %v515_v7  ;;  %v616_v1 = vmul.f32 %v584_v59, %v360_v48  ;;  %v358_v13 = vmul.f32 0.5, %v2287_v0  ;;  %v359_v20 = vmul.f32 0.5, %v2293_v4 }
 0x111   :  { %v1837_v36 = vpop.eup %1836  ;;  %1848 = vtanh.f32 %v512_v17  ;;  %v617_v9 = vmul.f32 %v585_v3, %v361_v30  ;;  %v356_v22 = vmul.f32 0.5, %v2334_v40  ;;  %v352_v59 = vmul.f32 0.5, %v2378_v19 }
 0x112   :  { %v1839_v43 = vpop.eup %1838  ;;  %v586_v53 = vadd.f32 1.0, %v1837_v36  ;;  %1850 = vtanh.f32 %v513_v61  ;;  %v614_v10 = vmul.f32 %v582_v34, %v358_v13  ;;  %v615_v0 = vmul.f32 %v583_v58, %v359_v20 }
 0x113   :  { %v1841_v54 = vpop.eup %1840  ;;  %v587_v50 = vadd.f32 1.0, %v1839_v43  ;;  %1852 = vtanh.f32 %v510_v24  ;;  %v357_v36 = vmul.f32 0.5, %v2345_v63  ;;  %v350_v3 = vmul.f32 0.5, %v2392_v14 }
 0x114   :  { %v1843_v2 = vpop.eup %1842  ;;  %v618_v26 = vmul.f32 %v586_v53, %v362_v27  ;;  %1854 = vtanh.f32 %v511_v11  ;;  %v580_v8 = vadd.f32 1.0, %v1841_v54  ;;  %v348_v34 = vmul.f32 0.5, %v2300_v6 }
 0x115   :  { %v1845_v7 = vpop.eup %1844  ;;  %v619_v39 = vmul.f32 %v587_v50, %v363_v45  ;;  %1856 = vtanh.f32 %v508_v42  ;;  %v581_v25 = vadd.f32 1.0, %v1843_v2  ;;  %v353_v45 = vmul.f32 0.5, %v2385_v52 }
 0x116   :  { %v1847_v17 = vpop.eup %1846  ;;  %668 = vmatpush.msrb.mxu0 %v618_v26  ;;  %1786 = vmatpush.msra.mxu2 %v618_v26  ;;  %1858 = vtanh.f32 %v509_v49  ;;  %v578_v56 = vadd.f32 1.0, %v1845_v7  ;;  %v612_v4 = vmul.f32 %v580_v8, %v356_v22  ;;  %v351_v26 = vmul.f32 0.5, %v2399_v57 }
 0x117   :  { %v1849_v61 = vpop.eup %1848  ;;  %829 = vmatpush.msrb.mxu1 %v619_v39  ;;  %1802 = vmatpush.msra.mxu3 %v619_v39  ;;  %1860 = vtanh.f32 %v506_v12  ;;  %v579_v42 = vadd.f32 1.0, %v1847_v17  ;;  %v354_v12 = vmul.f32 0.5, %v2356_v55  ;;  %v613_v40 = vmul.f32 %v581_v25, %v357_v36 }
 0x118   :  { %v1851_v24 = vpop.eup %1850  ;;  %669 = vmatpush.msrb.mxu0 %v616_v1  ;;  %1787 = vmatpush.msra.mxu2 %v616_v1  ;;  %1862 = vtanh.f32 %v507_v62  ;;  %v576_v43 = vadd.f32 1.0, %v1849_v61  ;;  %v355_v62 = vmul.f32 0.5, %v2367_v60  ;;  %v349_v39 = vmul.f32 0.5, %v2309_v51 }
 0x119   :  { %v1853_v11 = vpop.eup %1852  ;;  %830 = vmatpush.msrb.mxu1 %v617_v9  ;;  %1803 = vmatpush.msra.mxu3 %v617_v9  ;;  %1864 = vtanh.f32 %v504_v16  ;;  %v577_v53 = vadd.f32 1.0, %v1851_v24  ;;  %v610_v16 = vmul.f32 %v578_v56, %v354_v12  ;;  %v492_v57 = vmul.f32 0.7978845, %v2305_v18 }
 0x11a   :  { %v1855_v49 = vpop.eup %1854  ;;  %670 = vmatpush.msrb.mxu0 %v614_v10  ;;  %1788 = vmatpush.msra.mxu2 %v614_v10  ;;  %1866 = vtanh.f32 %v505_v32  ;;  %v574_v54 = vadd.f32 1.0, %v1853_v11  ;;  %v611_v32 = vmul.f32 %v579_v42, %v355_v62  ;;  %v346_v17 = vmul.f32 0.5, %v2266_v23  ;;  %v3695_v62 = vld [vmem:[#allocation13_spill] sm:$0xff] }
 0x11b   :  { %v1857_v27 = vpop.eup %1856  ;;  %831 = vmatpush.msrb.mxu1 %v615_v0  ;;  %1804 = vmatpush.msra.mxu3 %v615_v0  ;;  %1868 = vtanh.f32 %v2464_v5  ;;  %v575_v50 = vadd.f32 1.0, %v1855_v49  ;;  %v608_v5 = vmul.f32 %v576_v43, %v352_v59  ;;  %v493_v6 = vmul.f32 0.7978845, %v2314_v21  ;;  %v3696_v59 = vld [vmem:[#allocation8_spill] sm:$0xff] }
 0x11c   :  { %v1859_v63 = vpop.eup %1858  ;;  %671 = vmatpush.msrb.mxu0 %v612_v4  ;;  %1789 = vmatpush.msra.mxu2 %v612_v4  ;;  %1870 = vtanh.f32 %v2471_v28  ;;  %v572_v2 = vadd.f32 1.0, %v1857_v27  ;;  %v609_v28 = vmul.f32 %v577_v53, %v353_v45  ;;  %v347_v8 = vmul.f32 0.5, %v2274_v33  ;;  %v3693_v4 = vld [vmem:[#allocation12_spill] sm:$0xff] }
 0x11d   :  { %v1861_v55 = vpop.eup %1860  ;;  %832 = vmatpush.msrb.mxu1 %v613_v40  ;;  %1805 = vmatpush.msra.mxu3 %v613_v40  ;;  %1872 = vtanh.f32 %v2328_v38  ;;  %v573_v48 = vadd.f32 1.0, %v1859_v63  ;;  %v606_v38 = vmul.f32 %v574_v54, %v350_v3  ;;  %v344_v9 = vmul.f32 0.5, %v2244_v46  ;;  %v3694_v40 = vld [vmem:[#allocation7_spill] sm:$0xff] }
 0x11e   :  { %v1863_v60 = vpop.eup %1862  ;;  %672 = vmatpush.msrb.mxu0 %v610_v16  ;;  %1790 = vmatpush.msra.mxu2 %v610_v16  ;;  %1874 = vtanh.f32 %v2467_v15  ;;  %v570_v7 = vadd.f32 1.0, %v1861_v55  ;;  %v607_v15 = vmul.f32 %v575_v50, %v351_v26  ;;  %v345_v25 = vmul.f32 0.5, %v2246_v47  ;;  %v3692_v47 = vld [vmem:[#allocation9_spill] sm:$0xff]  ;;  %v3697_v55 = vld [vmem:[#allocation14_spill] sm:$0xff] }
 0x11f   :  { %v1865_v19 = vpop.eup %1864  ;;  %833 = vmatpush.msrb.mxu1 %v611_v32  ;;  %1806 = vmatpush.msra.mxu3 %v611_v32  ;;  %1876 = vtanh.f32 %v2320_v29  ;;  %v571_v30 = vadd.f32 1.0, %v1863_v60  ;;  %v604_v29 = vmul.f32 %v572_v2, %v348_v34  ;;  %v342_v10 = vmul.f32 0.5, %v2238_v41  ;;  %v3698_v60 = vld [vmem:[#allocation3_spill] sm:$0xff] }
 0x120   :  { %v1867_v52 = vpop.eup %1866  ;;  %673 = vmatpush.msrb.mxu0 %v608_v5  ;;  %1791 = vmatpush.msra.mxu2 %v608_v5  ;;  %1878 = vtanh.f32 %v2322_v35  ;;  %v568_v1 = vadd.f32 1.0, %v1865_v19  ;;  %v605_v35 = vmul.f32 %v573_v48, %v349_v39  ;;  %v602_v18 = vmul.f32 %v570_v7, %v346_v17  ;;  %v3699_v19 = vld [vmem:[#allocation4_spill] sm:$0xff]  ;;  %v3703_v17 = vld [vmem:[#allocation11_spill] sm:$0xff] }
 0x121   :  { %v1869_v14 = vpop.eup %1868  ;;  %834 = vmatpush.msrb.mxu1 %v609_v28  ;;  %1807 = vmatpush.msra.mxu3 %v609_v28  ;;  %v569_v61 = vadd.f32 1.0, %v1867_v52  ;;  %1880 = vtanh.f32 %v2270_v31  ;;  %v603_v21 = vmul.f32 %v571_v30, %v347_v8  ;;  %v340_v0 = vmul.f32 0.5, %v3692_v47  ;;  %v3700_v52 = vld [vmem:[#allocation5_spill] sm:$0xff]  ;;  %v635_v8 = vld [vmem:[%s3659_s3 + $0x78] sm:$0xff]  ;;  %v644_v47 = vld [vmem:[%s3659_s3 + $0xc0] sm:$0xff] }
 0x122   :  { %v1871_v58 = vpop.eup %1870  ;;  %674 = vmatpush.msrb.mxu0 %v606_v38  ;;  %1792 = vmatpush.msra.mxu2 %v606_v38  ;;  %v566_v20 = vadd.f32 1.0, %v1869_v14  ;;  %1882 = vtanh.f32 %v2278_v37  ;;  %v600_v31 = vmul.f32 %v568_v1, %v344_v9  ;;  %v343_v37 = vmul.f32 0.5, %v2240_v44  ;;  %v3701_v14 = vld [vmem:[#allocation6_spill] sm:$0xff]  ;;  %v637_v9 = vld [vmem:[%s3659_s3 + $0x88] sm:$0xff] }
 0x123   :  { %v1873_v13 = vpop.eup %1872  ;;  %835 = vmatpush.msrb.mxu1 %v607_v15  ;;  %1808 = vmatpush.msra.mxu3 %v607_v15  ;;  %v567_v24 = vadd.f32 1.0, %v1871_v58  ;;  %1884 = vtanh.f32 %v492_v57  ;;  %v601_v46 = vmul.f32 %v569_v61, %v345_v25  ;;  %v341_v41 = vmul.f32 0.5, %v3693_v4  ;;  %v3702_v57 = vld [vmem:[#allocation10_spill] sm:$0xff]  ;;  %v621_v61 = vld [vmem:[%s3659_s3 + $0x8] sm:$0xff]  ;;  %v632_v4 = vld [vmem:[%s3659_s3 + $0x60] sm:$0xff] }
 0x124   :  { %v1875_v51 = vpop.eup %1874  ;;  %675 = vmatpush.msrb.mxu0 %v604_v29  ;;  %1793 = vmatpush.msra.mxu2 %v604_v29  ;;  %v564_v22 = vadd.f32 1.0, %v1873_v13  ;;  %1886 = vtanh.f32 %v493_v6  ;;  %v598_v11 = vmul.f32 %v566_v20, %v342_v10  ;;  %v338_v44 = vmul.f32 0.5, %v3694_v40  ;;  %v623_v20 = vld [vmem:[%s3659_s3 + $0x18] sm:$0xff]  ;;  %v641_v10 = vld [vmem:[%s3659_s3 + $0xa8] sm:$0xff] }
 0x125   :  { %v1877_v23 = vpop.eup %1876  ;;  %836 = vmatpush.msrb.mxu1 %v605_v35  ;;  %1809 = vmatpush.msra.mxu3 %v605_v35  ;;  %v565_v56 = vadd.f32 1.0, %v1875_v51  ;;  %v599_v49 = vmul.f32 %v567_v24, %v343_v37  ;;  %v560_v53 = vadd.f32 1.0, %v3695_v62  ;;  %v339_v54 = vmul.f32 0.5, %v3696_v59  ;;  %v620_v35 = vld [vmem:[%s3659_s3] sm:$0xff]  ;;  %v639_v25 = vld [vmem:[%s3659_s3 + $0x98] sm:$0xff]  ;;  %v625_v24 = vld [vmem:[%s3659_s3 + $0x28] sm:$0xff] }
 0x126   :  { %v1879_v33 = vpop.eup %1878  ;;  %676 = vmatpush.msrb.mxu0 %v602_v18  ;;  %1794 = vmatpush.msra.mxu2 %v602_v18  ;;  %v562_v36 = vadd.f32 1.0, %v1877_v23  ;;  %v596_v27 = vmul.f32 %v564_v22, %v340_v0  ;;  %v561_v32 = vadd.f32 1.0, %v3697_v55  ;;  %v336_v5 = vmul.f32 0.5, %v3698_v60  ;;  %v636_v51 = vld [vmem:[%s3659_s3 + $0x80] sm:$0xff]  ;;  %v622_v18 = vld [vmem:[%s3659_s3 + $0x10] sm:$0xff]  ;;  %v627_v22 = vld [vmem:[%s3659_s3 + $0x38] sm:$0xff] }
 0x127   :  { %837 = vmatpush.msrb.mxu1 %v603_v21  ;;  %1810 = vmatpush.msra.mxu3 %v603_v21  ;;  %v1881_v42 = vpop.eup %1880  ;;  %v563_v12 = vadd.f32 1.0, %v1879_v33  ;;  %v597_v16 = vmul.f32 %v565_v56, %v341_v41  ;;  %v337_v28 = vmul.f32 0.5, %v3699_v19  ;;  %v334_v38 = vmul.f32 0.5, %v3700_v52  ;;  %v638_v23 = vld [vmem:[%s3659_s3 + $0x90] sm:$0xff]  ;;  %v624_v21 = vld [vmem:[%s3659_s3 + $0x20] sm:$0xff]  ;;  %v643_v56 = vld [vmem:[%s3659_s3 + $0xb8] sm:$0xff] }
 0x128   :  { %677 = vmatpush.msrb.mxu0 %v600_v31  ;;  %1795 = vmatpush.msra.mxu2 %v600_v31  ;;  %v1883_v43 = vpop.eup %1882  ;;  %v594_v50 = vmul.f32 %v562_v36, %v338_v44  ;;  %v558_v3 = vadd.f32 1.0, %v1881_v42  ;;  %v592_v48 = vmul.f32 %v560_v53, %v336_v5  ;;  %v335_v15 = vmul.f32 0.5, %v3701_v14  ;;  %v640_v33 = vld [vmem:[%s3659_s3 + $0xa0] sm:$0xff]  ;;  %v626_v31 = vld [vmem:[%s3659_s3 + $0x30] sm:$0xff]  ;;  %v645_v36 = vld [vmem:[%s3659_s3 + $0xc8] sm:$0xff] }
 0x129   :  { %838 = vmatpush.msrb.mxu1 %v601_v46  ;;  %1811 = vmatpush.msra.mxu3 %v601_v46  ;;  %v1885_v63 = vpop.eup %1884  ;;  %v595_v2 = vmul.f32 %v563_v12, %v339_v54  ;;  %v559_v26 = vadd.f32 1.0, %v1883_v43  ;;  %v593_v7 = vmul.f32 %v561_v32, %v337_v28  ;;  %v332_v58 = vmul.f32 0.5, %v3702_v57  ;;  %v642_v46 = vld [vmem:[%s3659_s3 + $0xb0] sm:$0xff]  ;;  %v628_v37 = vld [vmem:[%s3659_s3 + $0x40] sm:$0xff]  ;;  %v631_v42 = vld [vmem:[%s3659_s3 + $0x58] sm:$0xff] }
 0x12a   :  { %678 = vmatpush.msrb.mxu0 %v598_v11  ;;  %1796 = vmatpush.msra.mxu2 %v598_v11  ;;  %v1887_v45 = vpop.eup %1886  ;;  %v556_v34 = vadd.f32 1.0, %v1885_v63  ;;  %v590_v30 = vmul.f32 %v558_v3, %v334_v38  ;;  %v333_v1 = vmul.f32 0.5, %v3703_v17  ;;  %v629_v11 = vld [vmem:[%s3659_s3 + $0x48] sm:$0xff]  ;;  %v630_v0 = vld [vmem:[%s3659_s3 + $0x50] sm:$0xff]  ;;  %v647_v41 = vld [vmem:[%s3659_s3 + $0xd8] sm:$0xff] }
 0x12b   :  { %839 = vmatpush.msrb.mxu1 %v599_v49  ;;  %1812 = vmatpush.msra.mxu3 %v599_v49  ;;  %v557_v39 = vadd.f32 1.0, %v1887_v45  ;;  %v591_v29 = vmul.f32 %v559_v26, %v335_v15  ;;  %v646_v49 = vld [vmem:[%s3659_s3 + $0xd0] sm:$0xff]  ;;  %v633_v12 = vld [vmem:[%s3659_s3 + $0x68] sm:$0xff]  ;;  %v648_v43 = vld [vmem:[%s3659_s3 + $0xe0] sm:$0xff] }
 0x12c   :  { %679 = vmatpush.msrb.mxu0 %v596_v27  ;;  %1797 = vmatpush.msra.mxu2 %v596_v27  ;;  %v588_v6 = vmul.f32 %v556_v34, %v332_v58  ;;  %v634_v27 = vld [vmem:[%s3659_s3 + $0x70] sm:$0xff]  ;;  %v649_v40 = vld [vmem:[%s3659_s3 + $0xe8] sm:$0xff]  ;;  %v651_v53 = vld [vmem:[%s3659_s3 + $0xf8] sm:$0xff] }
 0x12d   :  { %840 = vmatpush.msrb.mxu1 %v597_v16  ;;  %1813 = vmatpush.msra.mxu3 %v597_v16  ;;  %v589_v13 = vmul.f32 %v557_v39, %v333_v1  ;;  %v650_v44 = vld [vmem:[%s3659_s3 + $0xf0] sm:$0xff]  ;;  %v652_v55 = vld [vmem:[%s3659_s3 + $0x100] sm:$0xff]  ;;  %v653_v5 = vld [vmem:[%s3659_s3 + $0x108] sm:$0xff] }
 0x12e   :  { %680 = vmatpush.msrb.mxu0 %v594_v50  ;;  %1798 = vmatpush.msra.mxu2 %v594_v50  ;;  %v654_v26 = vld [vmem:[%s3659_s3 + $0x110] sm:$0xff]  ;;  %v656_v57 = vld [vmem:[%s3659_s3 + $0x120] sm:$0xff] }
 0x12f   :  { %841 = vmatpush.msrb.mxu1 %v595_v2  ;;  %1814 = vmatpush.msra.mxu3 %v595_v2 }
 0x130   :  { %681 = vmatpush.msrb.mxu0 %v592_v48  ;;  %1799 = vmatpush.msra.mxu2 %v592_v48 }
 0x131   :  { %842 = vmatpush.msrb.mxu1 %v593_v7  ;;  %1815 = vmatpush.msra.mxu3 %v593_v7  ;;  %v655_v7 = vld [vmem:[%s3659_s3 + $0x118] sm:$0xff] }
 0x132   :  { %682 = vmatpush.msrb.mxu0 %v590_v30  ;;  %1800 = vmatpush.msra.mxu2 %v590_v30 }
 0x133   :  { %843 = vmatpush.msrb.mxu1 %v591_v29  ;;  %1816 = vmatpush.msra.mxu3 %v591_v29 }
 0x134   :  { %683 = vmatpush.msrb.mxu0 %v588_v6  ;;  %1801 = vmatpush.msra.mxu2 %v588_v6  ;;  %v657_v6 = vld [vmem:[%s3659_s3 + $0x128] sm:$0xff] }
 0x135   :  { %844 = vmatpush.msrb.mxu1 %v589_v13  ;;  %1817 = vmatpush.msra.mxu3 %v589_v13 }
 0x136   :  { %684 = vmatmul.f32.vlgmr.msrb.gmra.mxu0 %v620_v35  ;;  %729 = vmatmul.f32.vlgmr.msra.gmra.mxu2 %v635_v8 }
 0x137   :  { %845 = vmatmul.f32.vlgmr.msrb.gmra.mxu1 %v620_v35  ;;  %890 = vmatmul.f32.vlgmr.msra.gmra.mxu3 %v635_v8 }
 0x13e   :  { %687 = vmatmul.f32.gmra.mxu0 %v621_v61  ;;  %732 = vmatmul.f32.gmra.mxu2 %v636_v51 }
 0x13f   :  { %848 = vmatmul.f32.gmra.mxu1 %v621_v61  ;;  %893 = vmatmul.f32.gmra.mxu3 %v636_v51  ;;  %v658_v51 = vld [vmem:[%s3659_s3 + $0x130] sm:$0xff] }
 0x146   :  { %690 = vmatmul.f32.gmra.mxu0 %v622_v18  ;;  %735 = vmatmul.f32.gmra.mxu2 %v637_v9 }
 0x147   :  { %851 = vmatmul.f32.gmra.mxu1 %v622_v18  ;;  %896 = vmatmul.f32.gmra.mxu3 %v637_v9 }
 0x14e   :  { %693 = vmatmul.f32.gmra.mxu0 %v623_v20  ;;  %738 = vmatmul.f32.gmra.mxu2 %v638_v23 }
 0x14f   :  { %854 = vmatmul.f32.gmra.mxu1 %v623_v20  ;;  %899 = vmatmul.f32.gmra.mxu3 %v638_v23 }
 0x156   :  { %696 = vmatmul.f32.gmra.mxu0 %v624_v21  ;;  %741 = vmatmul.f32.gmra.mxu2 %v639_v25 }
 0x157   :  { %857 = vmatmul.f32.gmra.mxu1 %v624_v21  ;;  %902 = vmatmul.f32.gmra.mxu3 %v639_v25  ;;  %v659_v21 = vld [vmem:[%s3659_s3 + $0x138] sm:$0xff] }
 0x15e   :  { %699 = vmatmul.f32.gmra.mxu0 %v625_v24  ;;  %744 = vmatmul.f32.gmra.mxu2 %v640_v33 }
 0x15f   :  { %860 = vmatmul.f32.gmra.mxu1 %v625_v24  ;;  %905 = vmatmul.f32.gmra.mxu3 %v640_v33 }
 0x166   :  { %702 = vmatmul.f32.gmra.mxu0 %v626_v31  ;;  %747 = vmatmul.f32.gmra.mxu2 %v641_v10 }
 0x167   :  { %863 = vmatmul.f32.gmra.mxu1 %v626_v31  ;;  %908 = vmatmul.f32.gmra.mxu3 %v641_v10  ;;  %v660_v10 = vld [vmem:[%s3659_s3 + $0x140] sm:$0xff] }
 0x16e   :  { %705 = vmatmul.f32.gmra.mxu0 %v627_v22  ;;  %750 = vmatmul.f32.gmra.mxu2 %v642_v46 }
 0x16f   :  { %866 = vmatmul.f32.gmra.mxu1 %v627_v22  ;;  %911 = vmatmul.f32.gmra.mxu3 %v642_v46 }
 0x176   :  { %708 = vmatmul.f32.gmra.mxu0 %v628_v37  ;;  %753 = vmatmul.f32.gmra.mxu2 %v643_v56 }
 0x177   :  { %869 = vmatmul.f32.gmra.mxu1 %v628_v37  ;;  %914 = vmatmul.f32.gmra.mxu3 %v643_v56 }
 0x17e   :  { %711 = vmatmul.f32.gmra.mxu0 %v629_v11  ;;  %756 = vmatmul.f32.gmra.mxu2 %v644_v47 }
 0x17f   :  { %872 = vmatmul.f32.gmra.mxu1 %v629_v11  ;;  %917 = vmatmul.f32.gmra.mxu3 %v644_v47  ;;  %v661_v11 = vld [vmem:[%s3659_s3 + $0x148] sm:$0xff] }
 0x186   :  { %714 = vmatmul.f32.gmra.mxu0 %v630_v0  ;;  %759 = vmatmul.f32.gmra.mxu2 %v645_v36 }
 0x187   :  { %875 = vmatmul.f32.gmra.mxu1 %v630_v0  ;;  %920 = vmatmul.f32.gmra.mxu3 %v645_v36 }
 0x18e   :  { %717 = vmatmul.f32.gmra.mxu0 %v631_v42  ;;  %762 = vmatmul.f32.gmra.mxu2 %v646_v49 }
 0x18f   :  { %878 = vmatmul.f32.gmra.mxu1 %v631_v42  ;;  %923 = vmatmul.f32.gmra.mxu3 %v646_v49  ;;  %v662_v49 = vld [vmem:[%s3659_s3 + $0x150] sm:$0xff] }
 0x196   :  { %720 = vmatmul.f32.gmra.mxu0 %v632_v4  ;;  %765 = vmatmul.f32.gmra.mxu2 %v647_v41 }
 0x197   :  { %881 = vmatmul.f32.gmra.mxu1 %v632_v4  ;;  %926 = vmatmul.f32.gmra.mxu3 %v647_v41 }
 0x19e   :  { %723 = vmatmul.f32.gmra.mxu0 %v633_v12  ;;  %768 = vmatmul.f32.gmra.mxu2 %v648_v43 }
 0x19f   :  { %884 = vmatmul.f32.gmra.mxu1 %v633_v12  ;;  %929 = vmatmul.f32.gmra.mxu3 %v648_v43 }
 0x1a6   :  { %726 = vmatmul.f32.gmra.mxu0 %v634_v27  ;;  %771 = vmatmul.f32.gmra.mxu2 %v649_v40 }
 0x1a7   :  { %887 = vmatmul.f32.gmra.mxu1 %v634_v27  ;;  %932 = vmatmul.f32.gmra.mxu3 %v649_v40  ;;  %v663_v27 = vld [vmem:[%s3659_s3 + $0x158] sm:$0xff] }
 0x1ae   :  { %774 = vmatmul.f32.gmra.mxu2 %v650_v44 }
 0x1af   :  { %935 = vmatmul.f32.gmra.mxu3 %v650_v44 }
 0x1b3   :  { %v2611_v62 = vpop.f32.mrf.mxu0 }
 0x1b4   :  { %v2616_v63 = vpop.f32.mrf.mxu1 }
 0x1b6   :  { %777 = vmatmul.f32.gmra.mxu2 %v651_v53 }
 0x1b7   :  { %938 = vmatmul.f32.gmra.mxu3 %v651_v53 }
 0x1b9   :  { %v730_v16 = vpop.f32.mrf.mxu2 }
 0x1ba   :  { %v891_v59 = vpop.f32.mrf.mxu3  ;;  %1021 = vrot.lane.b32.xlu1 %v730_v16, %s1961_s20 }
 0x1bb   :  { %1053 = vrot.lane.b32.xlu2 %v891_v59, %s1961_s20  ;;  %v2620_v54 = vpop.f32.mrf.mxu0  ;;  %v664_v59 = vld [vmem:[%s3659_s3 + $0x160] sm:$0xff] }
 0x1bc   :  { %v2625_v32 = vpop.f32.mrf.mxu1 }
 0x1be   :  { %780 = vmatmul.f32.gmra.mxu2 %v652_v55 }
 0x1bf   :  { %941 = vmatmul.f32.gmra.mxu3 %v652_v55 }
 0x1c1   :  { %v2627_v45 = vpop.f32.mrf.mxu2 }
 0x1c2   :  { %3704 = vst [vmem:[#allocation9_spill] sm:$0xff] %v2627_v45  ;;  %v2629_v50 = vpop.f32.mrf.mxu3 }
 0x1c3   :  { %3705 = vst [vmem:[#allocation12_spill] sm:$0xff] %v2629_v50  ;;  %v691_v60 = vpop.f32.mrf.mxu0 }
 0x1c4   :  { %v852_v3 = vpop.f32.mrf.mxu1  ;;  %995 = vrot.lane.b32.xlu0 %v691_v60, %s1961_s20 }
 0x1c5   :  { %1027 = vrot.lane.b32.xlu1 %v852_v3, %s1961_s20  ;;  %v1055_v3 = vlaneseq }
 0x1c6   :  { %783 = vmatmul.f32.gmra.mxu2 %v653_v5 }
 0x1c7   :  { %944 = vmatmul.f32.gmra.mxu3 %v653_v5 }
 0x1c9   :  { %v2636_v2 = vpop.f32.mrf.mxu2 }
 0x1ca   :  { %3706 = vst [vmem:[#allocation7_spill] sm:$0xff] %v2636_v2  ;;  %v2638_v19 = vpop.f32.mrf.mxu3 }
 0x1cb   :  { %3707 = vst [vmem:[#allocation13_spill] sm:$0xff] %v2638_v19  ;;  %v694_v28 = vpop.f32.mrf.mxu0 }
 0x1cc   :  { %v855_v48 = vpop.f32.mrf.mxu1  ;;  %997 = vrot.lane.b32.xlu2 %v694_v28, %s1961_s20 }
 0x1cd   :  { %1029 = vrot.lane.b32.xlu0 %v855_v48, %s1961_s20 }
 0x1ce   :  { %786 = vmatmul.f32.gmra.mxu2 %v654_v26 }
 0x1cf   :  { %947 = vmatmul.f32.gmra.mxu3 %v654_v26  ;;  %v665_v26 = vld [vmem:[%s3659_s3 + $0x168] sm:$0xff] }
 0x1d1   :  { %v2645_v52 = vpop.f32.mrf.mxu2 }
 0x1d2   :  { %v2647_v38 = vpop.f32.mrf.mxu3 }
 0x1d3   :  { %v697_v34 = vpop.f32.mrf.mxu0 }
 0x1d4   :  { %v858_v14 = vpop.f32.mrf.mxu1  ;;  %999 = vrot.lane.b32.xlu1 %v697_v34, %s1961_s20  ;;  %v2744_v34 = vand.u32 127, %v1055_v3 }
 0x1d5   :  { %1031 = vrot.lane.b32.xlu2 %v858_v14, %s1961_s20 }
 0x1d6   :  { %789 = vmatmul.f32.gmra.mxu2 %v655_v7  ;;  %vm1057_vm1 = vcmp.lt.s32.totalorder %v2744_v34, 1  ;;  %vm1192_vm2 = vcmp.lt.s32.totalorder %v2744_v34, 127 }
 0x1d7   :  { %950 = vmatmul.f32.gmra.mxu3 %v655_v7 }
 0x1d9   :  { %v2654_v15 = vpop.f32.mrf.mxu2 }
 0x1da   :  { %v2656_v39 = vpop.f32.mrf.mxu3 }
 0x1db   :  { %v700_v30 = vpop.f32.mrf.mxu0 }
 0x1dc   :  { %v861_v58 = vpop.f32.mrf.mxu1  ;;  %1001 = vrot.lane.b32.xlu0 %v700_v30, %s1961_s20  ;;  %v666_v30 = vld [vmem:[%s3659_s3 + $0x170] sm:$0xff] }
 0x1dd   :  { %1033 = vrot.lane.b32.xlu1 %v861_v58, %s1961_s20 }
 0x1de   :  { %792 = vmatmul.f32.gmra.mxu2 %v656_v57 }
 0x1df   :  { %953 = vmatmul.f32.gmra.mxu3 %v656_v57 }
 0x1e1   :  { %v2663_v29 = vpop.f32.mrf.mxu2 }
 0x1e2   :  { %v2665_v17 = vpop.f32.mrf.mxu3 }
 0x1e3   :  { %v703_v1 = vpop.f32.mrf.mxu0 }
 0x1e4   :  { %v864_v13 = vpop.f32.mrf.mxu1  ;;  %1003 = vrot.lane.b32.xlu2 %v703_v1, %s1961_s20 }
 0x1e5   :  { %1035 = vrot.lane.b32.xlu0 %v864_v13, %s1961_s20 }
 0x1e6   :  { %795 = vmatmul.f32.gmra.mxu2 %v657_v6 }
 0x1e7   :  { %956 = vmatmul.f32.gmra.mxu3 %v657_v6 }
 0x1e9   :  { %v2672_v35 = vpop.f32.mrf.mxu2 }
 0x1ea   :  { %v2674_v8 = vpop.f32.mrf.mxu3 }
 0x1eb   :  { %v706_v61 = vpop.f32.mrf.mxu0 }
 0x1ec   :  { %v867_v18 = vpop.f32.mrf.mxu1  ;;  %1005 = vrot.lane.b32.xlu1 %v706_v61, %s1961_s20  ;;  %v990_v61 = vld [vmem:[%s3660_s7] sm:$0x3] }
 0x1ed   :  { %1037 = vrot.lane.b32.xlu2 %v867_v18, %s1961_s20  ;;  %v667_v18 = vld [vmem:[%s3659_s3 + $0x178] sm:$0xff]  ;;  %s1962_s3 = smov 127  }
 0x1ee   :  { %798 = vmatmul.f32.gmra.mxu2 %v658_v51 }
 0x1ef   :  { %959 = vmatmul.f32.gmra.mxu3 %v658_v51 }
 0x1f1   :  { %v2681_v9 = vpop.f32.mrf.mxu2 }
 0x1f2   :  { %v2683_v20 = vpop.f32.mrf.mxu3 }
 0x1f3   :  { %v709_v23 = vpop.f32.mrf.mxu0 }
 0x1f4   :  { %v870_v25 = vpop.f32.mrf.mxu1  ;;  %1007 = vrot.lane.b32.xlu0 %v709_v23, %s1961_s20  ;;  %v2768_v23 = vperm.slane %v990_v61, 0 }
 0x1f5   :  { %1039 = vrot.lane.b32.xlu1 %v870_v25, %s1961_s20 }
 0x1f6   :  { %801 = vmatmul.f32.gmra.mxu2 %v659_v21 }
 0x1f7   :  { %962 = vmatmul.f32.gmra.mxu3 %v659_v21  ;;  %v2770_v21 = vperm.slane %v990_v61, 1 }
 0x1f9   :  { %v2690_v24 = vpop.f32.mrf.mxu2 }
 0x1fa   :  { %v2692_v33 = vpop.f32.mrf.mxu3 }
 0x1fb   :  { %v712_v31 = vpop.f32.mrf.mxu0 }
 0x1fc   :  { %v873_v22 = vpop.f32.mrf.mxu1  ;;  %1009 = vrot.lane.b32.xlu2 %v712_v31, %s1961_s20 }
 0x1fd   :  { %1041 = vrot.lane.b32.xlu0 %v873_v22, %s1961_s20 }
 0x1fe   :  { %804 = vmatmul.f32.gmra.mxu2 %v660_v10 }
 0x1ff   :  { %965 = vmatmul.f32.gmra.mxu3 %v660_v10 }
 0x201   :  { %v2699_v46 = vpop.f32.mrf.mxu2 }
 0x202   :  { %v2701_v37 = vpop.f32.mrf.mxu3 }
 0x203   :  { %v715_v56 = vpop.f32.mrf.mxu0 }
 0x204   :  { %v876_v47 = vpop.f32.mrf.mxu1  ;;  %1011 = vrot.lane.b32.xlu1 %v715_v56, %s1961_s20 }
 0x205   :  { %1043 = vrot.lane.b32.xlu2 %v876_v47, %s1961_s20 }
 0x206   :  { %807 = vmatmul.f32.gmra.mxu2 %v661_v11 }
 0x207   :  { %968 = vmatmul.f32.gmra.mxu3 %v661_v11 }
 0x209   :  { %v2708_v0 = vpop.f32.mrf.mxu2 }
 0x20a   :  { %v2710_v36 = vpop.f32.mrf.mxu3 }
 0x20b   :  { %v718_v42 = vpop.f32.mrf.mxu0 }
 0x20c   :  { %v879_v4 = vpop.f32.mrf.mxu1  ;;  %1013 = vrot.lane.b32.xlu0 %v718_v42, %s1961_s20 }
 0x20d   :  { %1045 = vrot.lane.b32.xlu1 %v879_v4, %s1961_s20 }
 0x20e   :  { %810 = vmatmul.f32.gmra.mxu2 %v662_v49 }
 0x20f   :  { %971 = vmatmul.f32.gmra.mxu3 %v662_v49 }
 0x211   :  { %v2717_v41 = vpop.f32.mrf.mxu2 }
 0x212   :  { %v2719_v12 = vpop.f32.mrf.mxu3 }
 0x213   :  { %v721_v43 = vpop.f32.mrf.mxu0 }
 0x214   :  { %v882_v40 = vpop.f32.mrf.mxu1  ;;  %1015 = vrot.lane.b32.xlu2 %v721_v43, %s1961_s20 }
 0x215   :  { %1047 = vrot.lane.b32.xlu0 %v882_v40, %s1961_s20  ;;  %v1054_v57 = vpop.permute.xlu2 %1053 }
 0x216   :  { %813 = vmatmul.f32.gmra.mxu2 %v663_v27 }
 0x217   :  { %974 = vmatmul.f32.gmra.mxu3 %v663_v27 }
 0x219   :  { %v2726_v44 = vpop.f32.mrf.mxu2 }
 0x21a   :  { %3708 = vst [vmem:[#allocation8_spill] sm:$0xff] %v2726_v44  ;;  %v2728_v53 = vpop.f32.mrf.mxu3 }
 0x21b   :  { %3709 = vst [vmem:[#allocation14_spill] sm:$0xff] %v2728_v53  ;;  %v724_v16 = vpop.f32.mrf.mxu0 }
 0x21c   :  { %v885_v55 = vpop.f32.mrf.mxu1  ;;  %1017 = vrot.lane.b32.xlu1 %v724_v16, %s1961_s20 }
 0x21d   :  { %1049 = vrot.lane.b32.xlu2 %v885_v55, %s1961_s20 }
 0x21e   :  { %816 = vmatmul.f32.gmra.mxu2 %v664_v59 }
 0x21f   :  { %977 = vmatmul.f32.gmra.mxu3 %v664_v59 }
 0x221   :  { %v2735_v60 = vpop.f32.mrf.mxu2 }
 0x222   :  { %3710 = vst [vmem:[#allocation3_spill] sm:$0xff] %v2735_v60  ;;  %v2737_v5 = vpop.f32.mrf.mxu3 }
 0x223   :  { %3711 = vst [vmem:[#allocation4_spill] sm:$0xff] %v2737_v5  ;;  %v727_v28 = vpop.f32.mrf.mxu0 }
 0x224   :  { %v888_v48 = vpop.f32.mrf.mxu1  ;;  %1019 = vrot.lane.b32.xlu0 %v727_v28, %s1961_s20 }
 0x225   :  { %1051 = vrot.lane.b32.xlu1 %v888_v48, %s1961_s20 }
 0x226   :  { %819 = vmatmul.f32.gmra.mxu2 %v665_v26  ;;  %v998_v4 = vpop.permute.xlu2 %997 }
 0x227   :  { %980 = vmatmul.f32.gmra.mxu3 %v665_v26 }
 0x229   :  { %v2746_v7 = vpop.f32.mrf.mxu2 }
 0x22a   :  { %3712 = vst [vmem:[#allocation5_spill] sm:$0xff] %v2746_v7  ;;  %v2748_v14 = vpop.f32.mrf.mxu3 }
 0x22b   :  { %3713 = vst [vmem:[#allocation6_spill] sm:$0xff] %v2748_v14 }
 0x22c   :  { %v1022_v58 = vpop.permute.xlu1 %1021 }
 0x22d   :  { %v1073_v1 = vsel %vm1057_vm1, %v1022_v58, %v1054_v57  ;;  %v1089_v6 = vsel %vm1057_vm1, %v1054_v57, %v1022_v58 }
 0x22e   :  { %822 = vmatmul.f32.gmra.mxu2 %v666_v30  ;;  %v1125_v56 = vmul.f32 %v2768_v23, %v1089_v6  ;;  %v1126_v47 = vmul.f32 %v2770_v21, %v1073_v1 }
 0x22f   :  { %983 = vmatmul.f32.gmra.mxu3 %v666_v30  ;;  %v1032_v3 = vpop.permute.xlu2 %1031 }
 0x231   :  { %v2758_v13 = vpop.f32.mrf.mxu2 }
 0x232   :  { %3714 = vst [vmem:[#allocation10_spill] sm:$0xff] %v2758_v13  ;;  %v2763_v51 = vpop.f32.mrf.mxu3 }
 0x233   :  { %3715 = vst [vmem:[#allocation11_spill] sm:$0xff] %v2763_v51 }
 0x236   :  { %825 = vmatmul.f32.gmra.mxu2 %v667_v18  ;;  %v996_v25 = vpop.permute.xlu0 %995 }
 0x237   :  { %986 = vmatmul.f32.gmra.mxu3 %v667_v18  ;;  %v1028_v31 = vpop.permute.xlu1 %1027 }
 0x238   :  { %v2774_v10 = vsel %vm1057_vm1, %v996_v25, %v1028_v31  ;;  %v2778_v22 = vsel %vm1057_vm1, %v1028_v31, %v996_v25 }
 0x239   :  { %v778_v11 = vpop.f32.mrf.mxu2 }
 0x23a   :  { %v2782_v42 = vadd.f32 %v1125_v56, %v778_v11  ;;  %v939_v49 = vpop.f32.mrf.mxu3 }
 0x23b   :  { %v2784_v43 = vadd.f32 %v1126_v47, %v939_v49 }
 0x23c   :  { %3716 = vst [vmem:[#allocation15_spill] sm:$0xff] %v2782_v42 }
 0x23d   :  { %3717 = vst [vmem:[#allocation16_spill] sm:$0xff] %v2784_v43 }
 0x23e   :  { %v1004_v31 = vpop.permute.xlu2 %1003 }
 0x23f   :  { %v1030_v27 = vpop.permute.xlu0 %1029 }
 0x240   :  { %v2788_v40 = vsel %vm1057_vm1, %v998_v4, %v1030_v27  ;;  %v2792_v16 = vsel %vm1057_vm1, %v1030_v27, %v998_v4 }
 0x241   :  { %v2794_v59 = vpop.f32.mrf.mxu2 }
 0x242   :  { %v2796_v55 = vpop.f32.mrf.mxu3 }
 0x246   :  { %v1000_v28 = vpop.permute.xlu1 %999 }
 0x247   :  { %v2800_v26 = vsel %vm1057_vm1, %v1000_v28, %v1032_v3  ;;  %v2804_v48 = vsel %vm1057_vm1, %v1032_v3, %v1000_v28  ;;  %v1038_v27 = vpop.permute.xlu2 %1037 }
 0x249   :  { %v2806_v30 = vpop.f32.mrf.mxu2 }
 0x24a   :  { %v2808_v57 = vpop.f32.mrf.mxu3 }
 0x24e   :  { %v1002_v58 = vpop.permute.xlu0 %1001 }
 0x24f   :  { %v1034_v1 = vpop.permute.xlu1 %1033 }
 0x250   :  { %v2812_v6 = vsel %vm1057_vm1, %v1002_v58, %v1034_v1  ;;  %v2816_v61 = vsel %vm1057_vm1, %v1034_v1, %v1002_v58 }
 0x251   :  { %v2818_v18 = vpop.f32.mrf.mxu2 }
 0x252   :  { %v2820_v25 = vpop.f32.mrf.mxu3 }
 0x257   :  { %v1036_v56 = vpop.permute.xlu0 %1035 }
 0x258   :  { %v2824_v11 = vsel %vm1057_vm1, %v1004_v31, %v1036_v56  ;;  %v2828_v47 = vsel %vm1057_vm1, %v1036_v56, %v1004_v31 }
 0x259   :  { %v2830_v49 = vpop.f32.mrf.mxu2 }
 0x25a   :  { %v2832_v4 = vpop.f32.mrf.mxu3 }
 0x25e   :  { %v1006_v3 = vpop.permute.xlu1 %1005 }
 0x25f   :  { %v2836_v28 = vsel %vm1057_vm1, %v1006_v3, %v1038_v27  ;;  %v2840_v58 = vsel %vm1057_vm1, %v1038_v27, %v1006_v3  ;;  %v1010_v3 = vpop.permute.xlu2 %1009 }
 0x261   :  { %v793_v1 = vpop.f32.mrf.mxu2 }
 0x262   :  { %v954_v50 = vpop.f32.mrf.mxu3  ;;  %1136 = vrot.lane.b32.xlu1 %v793_v1, %s1962_s3 }
 0x263   :  { %1168 = vrot.lane.b32.xlu2 %v954_v50, %s1962_s3 }
 0x266   :  { %v1008_v31 = vpop.permute.xlu0 %1007 }
 0x267   :  { %v1040_v56 = vpop.permute.xlu1 %1039 }
 0x268   :  { %v2846_v45 = vsel %vm1057_vm1, %v1008_v31, %v1040_v56  ;;  %v2850_v19 = vsel %vm1057_vm1, %v1040_v56, %v1008_v31  ;;  %v1044_v31 = vpop.permute.xlu2 %1043 }
 0x269   :  { %v796_v2 = vpop.f32.mrf.mxu2 }
 0x26a   :  { %v957_v27 = vpop.f32.mrf.mxu3  ;;  %1138 = vrot.lane.b32.xlu0 %v796_v2, %s1962_s3 }
 0x26b   :  { %1170 = vrot.lane.b32.xlu1 %v957_v27, %s1962_s3 }
 0x26f   :  { %v1042_v1 = vpop.permute.xlu0 %1041 }
 0x270   :  { %v2856_v50 = vsel %vm1057_vm1, %v1010_v3, %v1042_v1  ;;  %v2860_v43 = vsel %vm1057_vm1, %v1042_v1, %v1010_v3 }
 0x271   :  { %v799_v42 = vpop.f32.mrf.mxu2 }
 0x272   :  { %v960_v51 = vpop.f32.mrf.mxu3  ;;  %1140 = vrot.lane.b32.xlu2 %v799_v42, %s1962_s3 }
 0x273   :  { %1172 = vrot.lane.b32.xlu0 %v960_v51, %s1962_s3 }
 0x276   :  { %v1012_v2 = vpop.permute.xlu1 %1011 }
 0x277   :  { %v2866_v56 = vsel %vm1057_vm1, %v1012_v2, %v1044_v31  ;;  %v2870_v27 = vsel %vm1057_vm1, %v1044_v31, %v1012_v2  ;;  %v1016_v31 = vpop.permute.xlu2 %1015 }
 0x279   :  { %v802_v13 = vpop.f32.mrf.mxu2 }
 0x27a   :  { %v963_v14 = vpop.f32.mrf.mxu3  ;;  %1142 = vrot.lane.b32.xlu1 %v802_v13, %s1962_s3 }
 0x27b   :  { %1174 = vrot.lane.b32.xlu2 %v963_v14, %s1962_s3 }
 0x27e   :  { %v1014_v3 = vpop.permute.xlu0 %1013 }
 0x27f   :  { %v1046_v42 = vpop.permute.xlu1 %1045 }
 0x280   :  { %v2876_v51 = vsel %vm1057_vm1, %v1014_v3, %v1046_v42  ;;  %v2880_v1 = vsel %vm1057_vm1, %v1046_v42, %v1014_v3  ;;  %v1050_v3 = vpop.permute.xlu2 %1049 }
 0x281   :  { %v805_v7 = vpop.f32.mrf.mxu2 }
 0x282   :  { %v966_v5 = vpop.f32.mrf.mxu3  ;;  %1144 = vrot.lane.b32.xlu0 %v805_v7, %s1962_s3 }
 0x283   :  { %1176 = vrot.lane.b32.xlu1 %v966_v5, %s1962_s3 }
 0x287   :  { %v1048_v13 = vpop.permute.xlu0 %1047 }
 0x288   :  { %v2886_v14 = vsel %vm1057_vm1, %v1016_v31, %v1048_v13  ;;  %v2890_v2 = vsel %vm1057_vm1, %v1048_v13, %v1016_v31 }
 0x289   :  { %3718 = vst [vmem:[#allocation17_spill] sm:$0xff] %v2886_v14  ;;  %v808_v60 = vpop.f32.mrf.mxu2 }
 0x28a   :  { %3719 = vst [vmem:[#allocation18_spill] sm:$0xff] %v2890_v2  ;;  %v969_v53 = vpop.f32.mrf.mxu3  ;;  %1146 = vrot.lane.b32.xlu2 %v808_v60, %s1962_s3 }
 0x28b   :  { %1178 = vrot.lane.b32.xlu0 %v969_v53, %s1962_s3 }
 0x28e   :  { %v1018_v7 = vpop.permute.xlu1 %1017 }
 0x28f   :  { %v2896_v5 = vsel %vm1057_vm1, %v1018_v7, %v1050_v3  ;;  %v2900_v42 = vsel %vm1057_vm1, %v1050_v3, %v1018_v7 }
 0x290   :  { %3720 = vst [vmem:[#allocation19_spill] sm:$0xff] %v2896_v5 }
 0x291   :  { %v811_v14 = vpop.f32.mrf.mxu2 }
 0x292   :  { %v972_v44 = vpop.f32.mrf.mxu3  ;;  %1148 = vrot.lane.b32.xlu1 %v811_v14, %s1962_s3 }
 0x293   :  { %1180 = vrot.lane.b32.xlu2 %v972_v44, %s1962_s3 }
 0x296   :  { %v1020_v31 = vpop.permute.xlu0 %1019 }
 0x297   :  { %v1052_v60 = vpop.permute.xlu1 %1051 }
 0x298   :  { %v2906_v53 = vsel %vm1057_vm1, %v1020_v31, %v1052_v60  ;;  %v2910_v13 = vsel %vm1057_vm1, %v1052_v60, %v1020_v31 }
 0x299   :  { %v814_v5 = vpop.f32.mrf.mxu2 }
 0x29a   :  { %v975_v2 = vpop.f32.mrf.mxu3  ;;  %1150 = vrot.lane.b32.xlu0 %v814_v5, %s1962_s3 }
 0x29b   :  { %1182 = vrot.lane.b32.xlu1 %v975_v2, %s1962_s3 }
 0x2a1   :  { %v817_v3 = vpop.f32.mrf.mxu2 }
 0x2a2   :  { %v978_v14 = vpop.f32.mrf.mxu3  ;;  %1152 = vrot.lane.b32.xlu2 %v817_v3, %s1962_s3 }
 0x2a3   :  { %1184 = vrot.lane.b32.xlu0 %v978_v14, %s1962_s3 }
 0x2a9   :  { %v820_v44 = vpop.f32.mrf.mxu2 }
 0x2aa   :  { %v981_v7 = vpop.f32.mrf.mxu3  ;;  %1154 = vrot.lane.b32.xlu1 %v820_v44, %s1962_s3 }
 0x2ab   :  { %1186 = vrot.lane.b32.xlu2 %v981_v7, %s1962_s3 }
 0x2b1   :  { %v823_v31 = vpop.f32.mrf.mxu2 }
 0x2b2   :  { %v984_v60 = vpop.f32.mrf.mxu3  ;;  %1156 = vrot.lane.b32.xlu0 %v823_v31, %s1962_s3  ;;  %v1105_v31 = vmul.f32 %v2768_v23, %v2816_v61 }
 0x2b3   :  { %1188 = vrot.lane.b32.xlu1 %v984_v60, %s1962_s3 }
 0x2b9   :  { %v826_v5 = vpop.f32.mrf.mxu2 }
 0x2ba   :  { %v987_v2 = vpop.f32.mrf.mxu3  ;;  %1158 = vrot.lane.b32.xlu2 %v826_v5, %s1962_s3 }
 0x2bb   :  { %993 = vrot.lane.b32.xlu1 %v2620_v54, %s1961_s20  ;;  %1190 = vrot.lane.b32.xlu0 %v987_v2, %s1962_s3  ;;  %v1127_v54 = vld [vmem:[%s3661_s8] sm:$0x3] }
 0x2c2   :  { %1134 = vrot.lane.b32.xlu2 %v2830_v49, %s1962_s3  ;;  %v1103_v49 = vmul.f32 %v2768_v23, %v2804_v48 }
 0x2c3   :  { %1164 = vrot.lane.b32.xlu1 %v2820_v25, %s1962_s3  ;;  %1166 = vrot.lane.b32.xlu0 %v2832_v4, %s1962_s3  ;;  %v1104_v25 = vmul.f32 %v2770_v21, %v2800_v26 }
 0x2c4   :  { %v1270_v4 = vadd.f32 %v1103_v49, %v2663_v29  ;;  %v1106_v29 = vmul.f32 %v2770_v21, %v2812_v6 }
 0x2c5   :  { %v1271_v3 = vadd.f32 %v1104_v25, %v2665_v17  ;;  %v1653_v25 = vld [vmem:[%s3662_s6 + $0x8] sm:$0xff] }
 0x2c6   :  { %v1273_v61 = vadd.f32 %v1106_v29, %v2674_v8  ;;  %v1108_v8 = vmul.f32 %v2770_v21, %v2824_v11  ;;  %v1655_v11 = vld [vmem:[%s3662_s6 + $0x18] sm:$0xff] }
 0x2ca   :  { %1025 = vrot.lane.b32.xlu2 %v2625_v32, %s1961_s20  ;;  %v2946_v32 = vperm.slane %v1127_v54, 0 }
 0x2cb   :  { %1130 = vrot.lane.b32.xlu1 %v2806_v30, %s1962_s3  ;;  %1132 = vrot.lane.b32.xlu0 %v2818_v18, %s1962_s3  ;;  %v2948_v30 = vperm.slane %v1127_v54, 1  ;;  %v1169_v18 = vpop.permute.xlu2 %1168 }
 0x2d2   :  { %991 = vrot.lane.b32.xlu2 %v2611_v62, %s1961_s20 }
 0x2d3   :  { %1160 = vrot.lane.b32.xlu1 %v2796_v55, %s1962_s3  ;;  %1023 = vrot.lane.b32.xlu0 %v2616_v63, %s1961_s20  ;;  %v1654_v63 = vld [vmem:[%s3662_s6 + $0x10] sm:$0xff]  ;;  %v1141_v5 = vpop.permute.xlu2 %1140 }
 0x2d4   :  { %v1137_v48 = vpop.permute.xlu1 %1136 }
 0x2d5   :  { %v1197_v26 = vsel %vm1192_vm2, %v1137_v48, %v1169_v18  ;;  %v1213_v62 = vsel %vm1192_vm2, %v1169_v18, %v1137_v48 }
 0x2d6   :  { %v1238_v14 = vmul.f32 %v2946_v32, %v1197_v26  ;;  %v1239_v44 = vmul.f32 %v2948_v30, %v1213_v62 }
 0x2d8   :  { %v1302_v55 = vadd.f32 %v1270_v4, %v1238_v14  ;;  %v1303_v7 = vadd.f32 %v1271_v3, %v1239_v44  ;;  %v1275_v14 = vadd.f32 %v1108_v8, %v2683_v20  ;;  %v1100_v20 = vmul.f32 %v2770_v21, %v2774_v10 }
 0x2d9   :  { %v1111_v10 = vmul.f32 %v2768_v23, %v2850_v19  ;;  %v1113_v19 = vmul.f32 %v2768_v23, %v2860_v43  ;;  %v1117_v43 = vmul.f32 %v2768_v23, %v2880_v1 }
 0x2da   :  { %1162 = vrot.lane.b32.xlu2 %v2808_v57, %s1962_s3  ;;  %v1272_v57 = vadd.f32 %v1105_v31, %v2672_v35  ;;  %v1107_v35 = vmul.f32 %v2768_v23, %v2828_v47 }
 0x2db   :  { %1668 = vperm.xlu1 %1822, %v1654_v63   ;;  %1128 = vrot.lane.b32.xlu0 %v2794_v59, %s1962_s3  ;;  %v1652_v59 = vld [vmem:[%s3662_s6] sm:$0xff]  ;;  %v1175_v47 = vpop.permute.xlu2 %1174 }
 0x2dc   :  { %v1139_v17 = vpop.permute.xlu0 %1138  ;;  %v1274_v3 = vadd.f32 %v1107_v35, %v2681_v9  ;;  %v1099_v9 = vmul.f32 %v2768_v23, %v2778_v22  ;;  %v1110_v22 = vmul.f32 %v2770_v21, %v2836_v28  ;;  %v1112_v28 = vmul.f32 %v2770_v21, %v2846_v45 }
 0x2dd   :  { %v1171_v60 = vpop.permute.xlu1 %1170  ;;  %v1278_v45 = vadd.f32 %v1111_v10, %v2699_v46  ;;  %v1280_v35 = vadd.f32 %v1113_v19, %v2708_v0  ;;  %v3725_v0 = vld [vmem:[#allocation18_spill] sm:$0xff]  ;;  %v3729_v19 = vld [vmem:[#allocation3_spill] sm:$0xff] }
 0x2de   :  { %v1198_v2 = vsel %vm1192_vm2, %v1139_v17, %v1171_v60  ;;  %v1214_v54 = vsel %vm1192_vm2, %v1171_v60, %v1139_v17  ;;  %v1279_v1 = vadd.f32 %v1112_v28, %v2701_v37 }
 0x2df   :  { %v1240_v49 = vmul.f32 %v2946_v32, %v1198_v2  ;;  %v1241_v6 = vmul.f32 %v2948_v30, %v1214_v54  ;;  %v1102_v2 = vmul.f32 %v2770_v21, %v2788_v40  ;;  %v3015_v54 = vstv %s3663_s4 }
 0x2e0   :  { %v3027_v40 = vadd.f32 %v1099_v9, %v2645_v52  ;;  %v1115_v52 = vmul.f32 %v2768_v23, %v2870_v27  ;;  %v1121_v9 = vmul.f32 %v2768_v23, %v2900_v42 }
 0x2e1   :  { %v1304_v18 = vadd.f32 %v1272_v57, %v1240_v49  ;;  %v1305_v48 = vadd.f32 %v1273_v61, %v1241_v6  ;;  %v1109_v61 = vmul.f32 %v2768_v23, %v2840_v58  ;;  %v3030_v49 = vadd.f32 %v1100_v20, %v2647_v38 }
 0x2e2   :  { %1658 = vperm.xlu2 %1823, %v1652_v59   ;;  %v3036_v58 = vadd.f32 %v1102_v2, %v2656_v39  ;;  %v1116_v39 = vmul.f32 %v2770_v21, %v2866_v56  ;;  %v3051_v59 = vadd.f32 %v3015_v54, %v1303_v7 }
 0x2e3   :  { %1663 = vperm.xlu0 %1821, %v1653_v25   ;;  %v1276_v38 = vadd.f32 %v1109_v61, %v2690_v24  ;;  %v3064_v56 = vadd.f32 %v3015_v54, %v1304_v18  ;;  %v3067_v7 = vadd.f32 %v3015_v54, %v1305_v48 }
 0x2e4   :  { %v3002_v17 = vpop.permute.xlu2 %1146  ;;  %3722 = vst [vmem:[#allocation21_spill] sm:$0xff] %v3051_v59 }
 0x2e5   :  { %v1173_v26 = vpop.permute.xlu0 %1172  ;;  %3723 = vst [vmem:[#allocation22_spill] sm:$0xff] %v3067_v7 }
 0x2e6   :  { %v1199_v62 = vsel %vm1192_vm2, %v1141_v5, %v1173_v26  ;;  %v1215_v4 = vsel %vm1192_vm2, %v1173_v26, %v1141_v5  ;;  %v1101_v5 = vmul.f32 %v2768_v23, %v2792_v16  ;;  %v3024_v16 = vadd.f32 %v3015_v54, %v1302_v55 }
 0x2e7   :  { %v1242_v44 = vmul.f32 %v2946_v32, %v1199_v62  ;;  %v1243_v63 = vmul.f32 %v2948_v30, %v1215_v4  ;;  %v1114_v55 = vmul.f32 %v2770_v21, %v2856_v50  ;;  %v3075_v26 = vadd.f32 %v1115_v52, %v2717_v41 }
 0x2e8   :  { %3721 = vst [vmem:[#allocation20_spill] sm:$0xff] %v3024_v16  ;;  %v3033_v6 = vadd.f32 %v1101_v5, %v2654_v15  ;;  %v1277_v15 = vadd.f32 %v1110_v22, %v2692_v33  ;;  %v1400_v24 = vmul.f32 0.044715, %v3024_v16  ;;  %v1118_v33 = vmul.f32 %v2770_v21, %v2876_v51 }
 0x2e9   :  { %v1306_v31 = vadd.f32 %v1274_v3, %v1242_v44  ;;  %v1307_v29 = vadd.f32 %v1275_v14, %v1243_v63  ;;  %v1281_v8 = vadd.f32 %v1114_v55, %v2710_v36  ;;  %v3078_v51 = vadd.f32 %v1116_v39, %v2719_v12  ;;  %v3724_v3 = vld [vmem:[#allocation8_spill] sm:$0xff]  ;;  %v3726_v12 = vld [vmem:[#allocation14_spill] sm:$0xff]  ;;  %v3727_v63 = vld [vmem:[#allocation17_spill] sm:$0xff] }
 0x2ea   :  { %1673 = vperm.xlu2 %1823, %v1655_v11   ;;  %v1401_v4 = vmul.f32 0.044715, %v3051_v59  ;;  %v3085_v37 = vadd.f32 %v1117_v43, %v3724_v3  ;;  %v1119_v36 = vmul.f32 %v2768_v23, %v3725_v0  ;;  %v1432_v14 = vmul.f32 %v1400_v24, %v3024_v16  ;;  %v3733_v0 = vld [vmem:[#allocation6_spill] sm:$0xff] }
 0x2eb   :  { %v3092_v44 = vadd.f32 %v1118_v33, %v3726_v12  ;;  %v1120_v11 = vmul.f32 %v2770_v21, %v3727_v63  ;;  %v3101_v20 = vadd.f32 %v3015_v54, %v1306_v31  ;;  %v3108_v61 = vadd.f32 %v3015_v54, %v1307_v29  ;;  %v3730_v31 = vld [vmem:[#allocation19_spill] sm:$0xff] }
 0x2ec   :  { %v1143_v60 = vpop.permute.xlu1 %1142  ;;  %v1433_v28 = vmul.f32 %v1401_v4, %v3051_v59  ;;  %v3114_v42 = vadd.f32 %v1119_v36, %v3729_v19  ;;  %v1122_v55 = vmul.f32 %v2770_v21, %v3730_v31  ;;  %v1464_v43 = vmul.f32 %v1432_v14, %v3024_v16 }
 0x2ed   :  { %v3056_v25 = vpop.permute.xlu2 %1180  ;;  %v1200_v50 = vsel %vm1192_vm2, %v1143_v60, %v1175_v47  ;;  %v1216_v46 = vsel %vm1192_vm2, %v1175_v47, %v1143_v60  ;;  %v1402_v47 = vmul.f32 0.044715, %v3064_v56  ;;  %v1403_v60 = vmul.f32 0.044715, %v3067_v7  ;;  %3728 = vst [vmem:[#allocation8_spill] sm:$0xff] %v3108_v61 }
 0x2ee   :  { %v1244_v18 = vmul.f32 %v2946_v32, %v1200_v50  ;;  %v1245_v41 = vmul.f32 %v2948_v30, %v1216_v46  ;;  %v1465_v3 = vmul.f32 %v1433_v28, %v3051_v59  ;;  %v3141_v36 = vadd.f32 %v1122_v55, %v3733_v0 }
 0x2ef   :  { %v1435_v50 = vmul.f32 %v1403_v60, %v3067_v7  ;;  %v1496_v14 = vadd.f32 %v1464_v43, %v3024_v16  ;;  %v1123_v12 = vmul.f32 %v2768_v23, %v2910_v13 }
 0x2f0   :  { %v1308_v22 = vadd.f32 %v1276_v38, %v1244_v18  ;;  %v1309_v52 = vadd.f32 %v1277_v15, %v1245_v41  ;;  %v1404_v18 = vmul.f32 0.044715, %v3101_v20 }
 0x2f1   :  { %v1528_v31 = vmul.f32 0.7978845, %v1496_v14 }
 0x2f2   :  { %v3144_v41 = vadd.f32 %v3015_v54, %v1309_v52 }
 0x2f3   :  { %1888 = vtanh.f32 %v1528_v31 }
 0x2f4   :  { %v1145_v57 = vpop.permute.xlu0 %1144  ;;  %v1407_v19 = vmul.f32 0.044715, %v3144_v41 }
 0x2f5   :  { %v1177_v27 = vpop.permute.xlu1 %1176 }
 0x2f6   :  { %v1201_v48 = vsel %vm1192_vm2, %v1145_v57, %v1177_v27  ;;  %v1217_v10 = vsel %vm1192_vm2, %v1177_v27, %v1145_v57  ;;  %v1434_v57 = vmul.f32 %v1402_v47, %v3064_v56  ;;  %v3731_v27 = vld [vmem:[#allocation4_spill] sm:$0xff]  ;;  %v1467_v47 = vmul.f32 %v1435_v50, %v3067_v7 }
 0x2f7   :  { %v1246_v5 = vmul.f32 %v2946_v32, %v1201_v48  ;;  %v3128_v24 = vadd.f32 %v1120_v11, %v3731_v27  ;;  %v1247_v33 = vmul.f32 %v2948_v30, %v1217_v10  ;;  %v3732_v48 = vld [vmem:[#allocation5_spill] sm:$0xff]  ;;  %v1497_v10 = vadd.f32 %v1465_v3, %v3051_v59 }
 0x2f8   :  { %v3133_v4 = vadd.f32 %v1121_v9, %v3732_v48  ;;  %v1466_v11 = vmul.f32 %v1434_v57, %v3064_v56  ;;  %v1499_v43 = vadd.f32 %v1467_v47, %v3067_v7  ;;  %v1439_v0 = vmul.f32 %v1407_v19, %v3144_v41 }
 0x2f9   :  { %v1310_v15 = vadd.f32 %v1278_v45, %v1246_v5  ;;  %v1311_v60 = vadd.f32 %v1279_v1, %v1247_v33  ;;  %v3735_v33 = vld [vmem:[#allocation11_spill] sm:$0xff] }
 0x2fb   :  { %v3153_v9 = vadd.f32 %v3015_v54, %v1310_v15 }
 0x2fc   :  { %v3118_v39 = vpop.permute.xlu2 %1152 }
 0x2fd   :  { %v1179_v62 = vpop.permute.xlu0 %1178  ;;  %v1408_v50 = vmul.f32 0.044715, %v3153_v9 }
 0x2fe   :  { %v1202_v2 = vsel %vm1192_vm2, %v3002_v17, %v1179_v62  ;;  %v1218_v29 = vsel %vm1192_vm2, %v1179_v62, %v3002_v17  ;;  %v3136_v17 = vadd.f32 %v3015_v54, %v1308_v22  ;;  %v1405_v62 = vmul.f32 0.044715, %v3108_v61 }
 0x2ff   :  { %v1248_v38 = vmul.f32 %v2946_v32, %v1202_v2  ;;  %v1249_v45 = vmul.f32 %v2948_v30, %v1218_v29  ;;  %v1436_v2 = vmul.f32 %v1404_v18, %v3101_v20  ;;  %v1124_v22 = vmul.f32 %v2770_v21, %v2906_v53  ;;  %v3734_v29 = vld [vmem:[#allocation10_spill] sm:$0xff] }
 0x300   :  { %v1406_v13 = vmul.f32 0.044715, %v3136_v17  ;;  %v1498_v53 = vadd.f32 %v1466_v11, %v3064_v56  ;;  %v1531_v11 = vmul.f32 0.7978845, %v1499_v43 }
 0x301   :  { %v1312_v63 = vadd.f32 %v1280_v35, %v1248_v38  ;;  %v1437_v35 = vmul.f32 %v1405_v62, %v3108_v61  ;;  %v1313_v28 = vadd.f32 %v1281_v8, %v1249_v45  ;;  %v3175_v38 = vadd.f32 %v1123_v12, %v3734_v29 }
 0x302   :  { %v3178_v8 = vadd.f32 %v3015_v54, %v1311_v60  ;;  %v1468_v27 = vmul.f32 %v1436_v2, %v3101_v20  ;;  %v3185_v15 = vadd.f32 %v1124_v22, %v3735_v33  ;;  %v1438_v48 = vmul.f32 %v1406_v13, %v3136_v17 }
 0x303   :  { %v3169_v55 = vadd.f32 %v3015_v54, %v1312_v63  ;;  %v1469_v62 = vmul.f32 %v1437_v35, %v3108_v61  ;;  %v3191_v3 = vadd.f32 %v3015_v54, %v1313_v28  ;;  %v1529_v45 = vmul.f32 0.7978845, %v1497_v10 }
 0x304   :  { %v1149_v46 = vpop.permute.xlu1 %1148  ;;  %v1530_v63 = vmul.f32 0.7978845, %v1498_v53  ;;  %v1440_v60 = vmul.f32 %v1408_v50, %v3153_v9  ;;  %v1500_v2 = vadd.f32 %v1468_v27, %v3101_v20  ;;  %v1471_v28 = vmul.f32 %v1439_v0, %v3144_v41 }
 0x305   :  { %v1203_v5 = vsel %vm1192_vm2, %v1149_v46, %v3056_v25  ;;  %v1219_v1 = vsel %vm1192_vm2, %v3056_v25, %v1149_v46  ;;  %v3180_v57 = vpop.permute.xlu2 %1186  ;;  %v1410_v12 = vmul.f32 0.044715, %v3169_v55  ;;  %v1501_v35 = vadd.f32 %v1469_v62, %v3108_v61  ;;  %v3746_v61 = vld [vmem:[#allocation15_spill] sm:$0xff] }
 0x306   :  { %v1250_v52 = vmul.f32 %v2946_v32, %v1203_v5  ;;  %v1251_v46 = vmul.f32 %v2948_v30, %v1219_v1  ;;  %v1409_v5 = vmul.f32 0.044715, %v3178_v8  ;;  %v1411_v10 = vmul.f32 0.044715, %v3191_v3 }
 0x307   :  { %v3209_v1 = vmul.f32 0.5, %v3064_v56  ;;  %1890 = vtanh.f32 %v1529_v45  ;;  %v1442_v31 = vmul.f32 %v1410_v12, %v3169_v55  ;;  %v1472_v29 = vmul.f32 %v1440_v60, %v3153_v9 }
 0x308   :  { %v1314_v14 = vadd.f32 %v3075_v26, %v1250_v52  ;;  %v1315_v22 = vadd.f32 %v3078_v51, %v1251_v46  ;;  %v1470_v26 = vmul.f32 %v1438_v48, %v3136_v17  ;;  %1892 = vtanh.f32 %v1530_v63  ;;  %v3216_v52 = vpop.eup %1888 }
 0x309   :  { %3736 = vst [vmem:[#allocation18_spill] sm:$0xff] %v3209_v1  ;;  %v1441_v56 = vmul.f32 %v1409_v5, %v3178_v8  ;;  %1894 = vtanh.f32 %v1531_v11  ;;  %v1532_v33 = vmul.f32 0.7978845, %v1500_v2  ;;  %v1533_v46 = vmul.f32 0.7978845, %v1501_v35 }
 0x30a   :  { %v3212_v19 = vadd.f32 %v3015_v54, %v1314_v14  ;;  %3737 = vst [vmem:[#allocation14_spill] sm:$0xff] %v3216_v52  ;;  %v1502_v27 = vadd.f32 %v1470_v26, %v3136_v17  ;;  %v1443_v62 = vmul.f32 %v1411_v10, %v3191_v3  ;;  %v1503_v0 = vadd.f32 %v1471_v28, %v3144_v41 }
 0x30b   :  { %v1474_v63 = vmul.f32 %v1442_v31, %v3169_v55  ;;  %v1473_v5 = vmul.f32 %v1441_v56, %v3178_v8  ;;  %1896 = vtanh.f32 %v1532_v33 }
 0x30c   :  { %v1151_v25 = vpop.permute.xlu0 %1150  ;;  %v1412_v12 = vmul.f32 0.044715, %v3212_v19  ;;  %v1534_v35 = vmul.f32 0.7978845, %v1502_v27  ;;  %v1535_v10 = vmul.f32 0.7978845, %v1503_v0  ;;  %1898 = vtanh.f32 %v1533_v46 }
 0x30d   :  { %v1183_v18 = vpop.permute.xlu1 %1182  ;;  %v3239_v11 = vpop.eup %1890  ;;  %v1475_v31 = vmul.f32 %v1443_v62, %v3191_v3  ;;  %v1505_v56 = vadd.f32 %v1473_v5, %v3178_v8  ;;  %v3283_v62 = vmul.f32 0.5, %v3153_v9 }
 0x30e   :  { %v1204_v47 = vsel %vm1192_vm2, %v1151_v25, %v1183_v18  ;;  %v1220_v13 = vsel %vm1192_vm2, %v1183_v18, %v1151_v25  ;;  %v3224_v25 = vadd.f32 %v3015_v54, %v1315_v22  ;;  %3738 = vst [vmem:[#allocation17_spill] sm:$0xff] %v3239_v11  ;;  %v3245_v2 = vpop.eup %1892  ;;  %1900 = vtanh.f32 %v1534_v35 }
 0x30f   :  { %v1252_v51 = vmul.f32 %v2946_v32, %v1204_v47  ;;  %v1253_v53 = vmul.f32 %v2948_v30, %v1220_v13  ;;  %3739 = vst [vmem:[#allocation3_spill] sm:$0xff] %v3245_v2  ;;  %v3250_v13 = vmul.f32 0.5, %v3101_v20  ;;  %v3252_v26 = vpop.eup %1894 }
 0x310   :  { %v1413_v22 = vmul.f32 0.044715, %v3224_v25  ;;  %3741 = vst [vmem:[#allocation4_spill] sm:$0xff] %v3252_v26 }
 0x311   :  { %v1316_v45 = vadd.f32 %v3085_v37, %v1252_v51  ;;  %v1317_v47 = vadd.f32 %v3092_v44, %v1253_v53  ;;  %3740 = vst [vmem:[#allocation19_spill] sm:$0xff] %v3250_v13  ;;  %v3255_v44 = vmul.f32 0.5, %v3136_v17  ;;  %v1444_v51 = vmul.f32 %v1412_v12, %v3212_v19  ;;  %v1897_v0 = vpop.eup %1896 }
 0x312   :  { %v1445_v46 = vmul.f32 %v1413_v22, %v3224_v25  ;;  %v1537_v22 = vmul.f32 0.7978845, %v1505_v56 }
 0x313   :  { %3742 = vst [vmem:[#allocation5_spill] sm:$0xff] %v3255_v44  ;;  %v3258_v28 = vadd.f32 %v3015_v54, %v1316_v45  ;;  %v3264_v20 = vadd.f32 %v3015_v54, %v1317_v47 }
 0x314   :  { %v3219_v43 = vpop.permute.xlu2 %1158 }
 0x315   :  { %v1185_v50 = vpop.permute.xlu0 %1184  ;;  %v1414_v45 = vmul.f32 0.044715, %v3258_v28 }
 0x316   :  { %v1205_v18 = vsel %vm1192_vm2, %v3118_v39, %v1185_v50  ;;  %v1221_v48 = vsel %vm1192_vm2, %v1185_v50, %v3118_v39  ;;  %v1504_v39 = vadd.f32 %v1472_v29, %v3153_v9  ;;  %v1415_v9 = vmul.f32 0.044715, %v3264_v20 }
 0x317   :  { %v1254_v14 = vmul.f32 %v2946_v32, %v1205_v18  ;;  %v1255_v60 = vmul.f32 %v2948_v30, %v1221_v48 }
 0x318   :  { %v1536_v17 = vmul.f32 0.7978845, %v1504_v39  ;;  %v1447_v56 = vmul.f32 %v1415_v9, %v3264_v20 }
 0x319   :  { %v1318_v37 = vadd.f32 %v3114_v42, %v1254_v14  ;;  %v1506_v42 = vadd.f32 %v1474_v63, %v3169_v55  ;;  %v1319_v53 = vadd.f32 %v3128_v24, %v1255_v60  ;;  %v1476_v14 = vmul.f32 %v1444_v51, %v3212_v19  ;;  %v3288_v63 = vpop.eup %1898 }
 0x31a   :  { %3743 = vst [vmem:[#allocation6_spill] sm:$0xff] %v3288_v63  ;;  %1902 = vtanh.f32 %v1536_v17  ;;  %v3749_v63 = vld [vmem:[#allocation13_spill] sm:$0xff] }
 0x31b   :  { %v3269_v50 = vadd.f32 %v3015_v54, %v1318_v37  ;;  %v1538_v12 = vmul.f32 0.7978845, %v1506_v42  ;;  %v3291_v47 = vadd.f32 %v3015_v54, %v1319_v53  ;;  %v1477_v37 = vmul.f32 %v1445_v46, %v3224_v25  ;;  %v3313_v53 = vpop.eup %1900 }
 0x31c   :  { %v1155_v29 = vpop.permute.xlu1 %1154  ;;  %v3278_v18 = vpop.permute.xlu2 %1134  ;;  %v3305_v42 = vmul.f32 0.5, %v3178_v8  ;;  %1904 = vtanh.f32 %v1535_v10 }
 0x31d   :  { %v1206_v27 = vsel %vm1192_vm2, %v1155_v29, %v3180_v57  ;;  %v1222_v33 = vsel %vm1192_vm2, %v3180_v57, %v1155_v29  ;;  %v1507_v57 = vadd.f32 %v1475_v31, %v3191_v3  ;;  %v1416_v5 = vmul.f32 0.044715, %v3269_v50 }
 0x31e   :  { %v1256_v24 = vmul.f32 %v2946_v32, %v1206_v27  ;;  %v1257_v48 = vmul.f32 %v2948_v30, %v1222_v33  ;;  %3744 = vst [vmem:[#allocation10_spill] sm:$0xff] %v3305_v42  ;;  %1906 = vtanh.f32 %v1538_v12  ;;  %v3311_v31 = vadd.f32 1.0, %v1897_v0 }
 0x31f   :  { %v1417_v17 = vmul.f32 0.044715, %v3291_v47  ;;  %v1508_v27 = vadd.f32 %v1476_v14, %v3212_v19  ;;  %v1539_v8 = vmul.f32 0.7978845, %v1507_v57  ;;  %v1448_v10 = vmul.f32 %v1416_v5, %v3269_v50 }
 0x320   :  { %v1320_v60 = vadd.f32 %v3133_v4, %v1256_v24  ;;  %v1321_v39 = vadd.f32 %v3141_v36, %v1257_v48  ;;  %v1446_v4 = vmul.f32 %v1414_v45, %v3258_v28  ;;  %v3309_v36 = vmul.f32 0.5, %v3169_v55  ;;  %3745 = vst [vmem:[#allocation11_spill] sm:$0xff] %v3311_v31  ;;  %v1903_v14 = vpop.eup %1902 }
 0x321   :  { %v1509_v46 = vadd.f32 %v1477_v37, %v3224_v25  ;;  %v3321_v55 = vmul.f32 0.5, %v3191_v3  ;;  %1908 = vtanh.f32 %v1537_v22  ;;  %v3333_v3 = vmul.f32 0.5, %v3212_v19 }
 0x322   :  { %v3299_v35 = vadd.f32 %v3015_v54, %v1320_v60  ;;  %v3302_v51 = vadd.f32 %v3015_v54, %v1321_v39  ;;  %v1478_v60 = vmul.f32 %v1446_v4, %v3258_v28  ;;  %v3335_v39 = vpop.eup %1904  ;;  %v1449_v5 = vmul.f32 %v1417_v17, %v3291_v47 }
 0x323   :  { %v1479_v37 = vmul.f32 %v1447_v56, %v3264_v20  ;;  %v1540_v22 = vmul.f32 0.7978845, %v1508_v27  ;;  %1910 = vtanh.f32 %v1539_v8  ;;  %v1480_v4 = vmul.f32 %v1448_v10, %v3269_v50 }
 0x324   :  { %v1157_v29 = vpop.permute.xlu0 %1156  ;;  %v1418_v0 = vmul.f32 0.044715, %v3299_v35  ;;  %v1419_v45 = vmul.f32 0.044715, %v3302_v51  ;;  %v3337_v9 = vpop.permute.xlu2 %1025  ;;  %v3345_v19 = vmul.f32 0.5, %v3224_v25  ;;  %v3349_v17 = vadd.f32 1.0, %v1903_v14 }
 0x325   :  { %v1189_v33 = vpop.permute.xlu1 %1188  ;;  %v1541_v1 = vmul.f32 0.7978845, %v1509_v46  ;;  %v1510_v25 = vadd.f32 %v1478_v60, %v3258_v28  ;;  %v1481_v8 = vmul.f32 %v1449_v5, %v3291_v47  ;;  %v3365_v10 = vmul.f32 0.5, %v3264_v20 }
 0x326   :  { %v1207_v24 = vsel %vm1192_vm2, %v1157_v29, %v1189_v33  ;;  %v1223_v48 = vsel %vm1192_vm2, %v1189_v33, %v1157_v29  ;;  %v1907_v29 = vpop.eup %1906  ;;  %v1451_v59 = vmul.f32 %v1419_v45, %v3302_v51  ;;  %v1511_v46 = vadd.f32 %v1479_v37, %v3264_v20 }
 0x327   :  { %v1258_v12 = vmul.f32 %v2946_v32, %v1207_v24  ;;  %v1259_v57 = vmul.f32 %v2948_v30, %v1223_v48  ;;  %v1450_v48 = vmul.f32 %v1418_v0, %v3299_v35  ;;  %v3351_v56 = vpop.eup %1908  ;;  %1912 = vtanh.f32 %v1540_v22 }
 0x328   :  { %v1483_v37 = vmul.f32 %v1451_v59, %v3302_v51  ;;  %1914 = vtanh.f32 %v1541_v1  ;;  %v1513_v16 = vadd.f32 %v1481_v8, %v3291_v47  ;;  %v1543_v7 = vmul.f32 0.7978845, %v1511_v46 }
 0x329   :  { %v1322_v33 = vadd.f32 %v3175_v38, %v1258_v12  ;;  %v1323_v24 = vadd.f32 %v3185_v15, %v1259_v57  ;;  %v3360_v15 = vmul.f32 0.5, %v3258_v28  ;;  %v1512_v57 = vadd.f32 %v1480_v4, %v3269_v50  ;;  %v1911_v28 = vpop.eup %1910 }
 0x32a   :  { %v1482_v5 = vmul.f32 %v1450_v48, %v3299_v35  ;;  %v1542_v4 = vmul.f32 0.7978845, %v1510_v25  ;;  %v3390_v13 = vadd.f32 1.0, %v1911_v28  ;;  %v3405_v46 = vmul.f32 0.5, %v3269_v50 }
 0x32b   :  { %v3354_v27 = vadd.f32 %v3015_v54, %v1322_v33  ;;  %v3357_v38 = vadd.f32 %v3015_v54, %v1323_v24  ;;  %v3373_v33 = vadd.f32 1.0, %v1907_v29  ;;  %v1544_v48 = vmul.f32 0.7978845, %v1512_v57 }
 0x32c   :  { %1916 = vtanh.f32 %v1542_v4 }
 0x32d   :  { %v3368_v0 = vpop.permute.xlu1 %993  ;;  %v1191_v45 = vpop.permute.xlu0 %1190  ;;  %v1420_v14 = vmul.f32 0.044715, %v3354_v27  ;;  %v1421_v12 = vmul.f32 0.044715, %v3357_v38  ;;  %1918 = vtanh.f32 %v1543_v7 }
 0x32e   :  { %v1208_v60 = vsel %vm1192_vm2, %v3219_v43, %v1191_v45  ;;  %v1224_v20 = vsel %vm1192_vm2, %v1191_v45, %v3219_v43  ;;  %v3747_v43 = vld [vmem:[#allocation16_spill] sm:$0xff]  ;;  %v1913_v59 = vpop.eup %1912  ;;  %1920 = vtanh.f32 %v1544_v48 }
 0x32f   :  { %v1260_v22 = vmul.f32 %v2946_v32, %v1208_v60  ;;  %v1261_v24 = vmul.f32 %v2948_v30, %v1224_v20  ;;  %v1452_v29 = vmul.f32 %v1420_v14, %v3354_v27  ;;  %v1453_v11 = vmul.f32 %v1421_v12, %v3357_v38  ;;  %v3392_v60 = vpop.permute.xlu2 %991 }
 0x330   :  { %v1514_v14 = vadd.f32 %v1482_v5, %v3299_v35  ;;  %v1515_v12 = vadd.f32 %v1483_v37, %v3302_v51  ;;  %v1545_v20 = vmul.f32 0.7978845, %v1513_v16 }
 0x331   :  { %v1324_v31 = vadd.f32 %v3746_v61, %v1260_v22  ;;  %v1325_v45 = vadd.f32 %v3747_v43, %v1261_v24  ;;  %v1484_v25 = vmul.f32 %v1452_v29, %v3354_v27  ;;  %v1485_v1 = vmul.f32 %v1453_v11, %v3357_v38  ;;  %v3409_v11 = vpop.eup %1914 }
 0x332   :  { %v3414_v24 = vmul.f32 0.5, %v3291_v47  ;;  %v1546_v7 = vmul.f32 0.7978845, %v1514_v14  ;;  %v1547_v4 = vmul.f32 0.7978845, %v1515_v12  ;;  %v1075_v47 = vsel %vm1057_vm1, %v3337_v9, %v3368_v0  ;;  %v1917_v52 = vpop.eup %1916 }
 0x333   :  { %v3399_v8 = vadd.f32 %v3015_v54, %v1324_v31  ;;  %v3402_v61 = vadd.f32 %v3015_v54, %v1325_v45  ;;  %v1516_v57 = vadd.f32 %v1484_v25, %v3354_v27  ;;  %v1517_v28 = vadd.f32 %v1485_v1, %v3357_v38 }
 0x334   :  { %1922 = vtanh.f32 %v1545_v20  ;;  %v1605_v34 = vadd.f32 1.0, %v3409_v11 }
 0x335   :  { %v1165_v5 = vpop.permute.xlu1 %1164  ;;  %v1167_v37 = vpop.permute.xlu0 %1166  ;;  %v1422_v31 = vmul.f32 0.044715, %v3399_v8  ;;  %v1423_v22 = vmul.f32 0.044715, %v3402_v61  ;;  %v1548_v25 = vmul.f32 0.7978845, %v1516_v57  ;;  %1924 = vtanh.f32 %v1546_v7 }
 0x336   :  { %v1196_v50 = vsel %vm1192_vm2, %v3278_v18, %v1167_v37  ;;  %v1212_v16 = vsel %vm1192_vm2, %v1167_v37, %v3278_v18  ;;  %v1549_v1 = vmul.f32 0.7978845, %v1517_v28  ;;  %v3441_v57 = vmul.f32 0.5, %v3299_v35 }
 0x337   :  { %v1236_v29 = vmul.f32 %v2946_v32, %v1196_v50  ;;  %v1237_v43 = vmul.f32 %v2948_v30, %v1212_v16  ;;  %v1454_v45 = vmul.f32 %v1422_v31, %v3399_v8  ;;  %v1455_v48 = vmul.f32 %v1423_v22, %v3402_v61  ;;  %v3434_v31 = vpop.eup %1918 }
 0x338   :  { %v1059_v22 = vsel %vm1057_vm1, %v3368_v0, %v3337_v9  ;;  %v3443_v28 = vadd.f32 1.0, %v1913_v59  ;;  %v3448_v50 = vmul.f32 0.5, %v3302_v51  ;;  %1926 = vtanh.f32 %v1547_v4 }
 0x339   :  { %v1300_v18 = vadd.f32 %v3033_v6, %v1236_v29  ;;  %v1301_v14 = vadd.f32 %v3036_v58, %v1237_v43  ;;  %v1486_v12 = vmul.f32 %v1454_v45, %v3399_v8  ;;  %v1487_v37 = vmul.f32 %v1455_v48, %v3402_v61  ;;  %v1921_v6 = vpop.eup %1920  ;;  %v1163_v29 = vpop.permute.xlu2 %1162 }
 0x33a   :  { %v1097_v16 = vmul.f32 %v2768_v23, %v1075_v47  ;;  %1928 = vtanh.f32 %v1548_v25  ;;  %v1098_v0 = vmul.f32 %v2770_v21, %v1059_v22  ;;  %v3458_v51 = vpop.eup %1922  ;;  %v1608_v22 = vadd.f32 1.0, %v1921_v6 }
 0x33b   :  { %v1518_v58 = vadd.f32 %v1486_v12, %v3399_v8  ;;  %v1519_v20 = vadd.f32 %v1487_v37, %v3402_v61  ;;  %v3452_v9 = vadd.f32 %v3015_v54, %v1300_v18  ;;  %v3455_v35 = vadd.f32 %v3015_v54, %v1301_v14  ;;  %v1925_v37 = vpop.eup %1924 }
 0x33c   :  { %1930 = vtanh.f32 %v1549_v1  ;;  %v3480_v6 = vadd.f32 1.0, %v1917_v52 }
 0x33d   :  { %v1131_v59 = vpop.permute.xlu1 %1130  ;;  %v1133_v7 = vpop.permute.xlu0 %1132  ;;  %v1550_v43 = vmul.f32 0.7978845, %v1518_v58  ;;  %v1551_v45 = vmul.f32 0.7978845, %v1519_v20  ;;  %v1398_v58 = vmul.f32 0.044715, %v3452_v9 }
 0x33e   :  { %v1194_v4 = vsel %vm1192_vm2, %v1131_v59, %v1163_v29  ;;  %v1210_v48 = vsel %vm1192_vm2, %v1163_v29, %v1131_v59  ;;  %v1195_v47 = vsel %vm1192_vm2, %v1133_v7, %v1165_v5  ;;  %v1211_v25 = vsel %vm1192_vm2, %v1165_v5, %v1133_v7  ;;  %v1927_v29 = vpop.eup %1926  ;;  %v3748_v59 = vld [vmem:[#allocation7_spill] sm:$0xff] }
 0x33f   :  { %v1232_v18 = vmul.f32 %v2946_v32, %v1194_v4  ;;  %v1233_v14 = vmul.f32 %v2948_v30, %v1210_v48  ;;  %v1234_v1 = vmul.f32 %v2946_v32, %v1195_v47  ;;  %v1235_v12 = vmul.f32 %v2948_v30, %v1211_v25 }
 0x340   :  { %1932 = vtanh.f32 %v1550_v43  ;;  %v1399_v20 = vmul.f32 0.044715, %v3455_v35  ;;  %v1264_v26 = vadd.f32 %v1097_v16, %v3748_v59  ;;  %v1265_v5 = vadd.f32 %v1098_v0, %v3749_v63  ;;  %v1929_v48 = vpop.eup %1928 }
 0x341   :  { %v1298_v7 = vadd.f32 %v3027_v40, %v1234_v1  ;;  %v1299_v4 = vadd.f32 %v3030_v49, %v1235_v12  ;;  %1934 = vtanh.f32 %v1551_v45  ;;  %v1388_v47 = vmul.f32 0.5, %v3354_v27 }
 0x342   :  { %v1389_v43 = vmul.f32 0.5, %v3357_v38  ;;  %v1931_v25 = vpop.eup %1930  ;;  %v1296_v44 = vadd.f32 %v1264_v26, %v1232_v18  ;;  %v1297_v42 = vadd.f32 %v1265_v5, %v1233_v14  ;;  %v1390_v40 = vmul.f32 0.5, %v3399_v8 }
 0x343   :  { %v3483_v2 = vadd.f32 %v3015_v54, %v1298_v7  ;;  %v3486_v63 = vadd.f32 %v3015_v54, %v1299_v4  ;;  %v3490_v49 = vmul.f32 %v1608_v22, %v3405_v46  ;;  %v1430_v27 = vmul.f32 %v1398_v58, %v3452_v9 }
 0x344   :  { %v1431_v38 = vmul.f32 %v1399_v20, %v3455_v35  ;;  %v1610_v16 = vadd.f32 1.0, %v1925_v37  ;;  %v1611_v0 = vadd.f32 1.0, %v1927_v29  ;;  %v1612_v46 = vadd.f32 1.0, %v1929_v48 }
 0x345   :  { %v1024_v52 = vpop.permute.xlu0 %1023  ;;  %v1396_v26 = vmul.f32 0.044715, %v3483_v2  ;;  %v1397_v45 = vmul.f32 0.044715, %v3486_v63  ;;  %v1613_v1 = vadd.f32 1.0, %v1931_v25  ;;  %v3503_v12 = vadd.f32 %v3015_v54, %v1296_v44 }
 0x346   :  { %v1933_v18 = vpop.eup %1932  ;;  %v1058_v14 = vsel %vm1057_vm1, %v3392_v60, %v1024_v52  ;;  %v1074_v8 = vsel %vm1057_vm1, %v1024_v52, %v3392_v60  ;;  %v3506_v37 = vadd.f32 %v3015_v54, %v1297_v42  ;;  %v1462_v59 = vmul.f32 %v1430_v27, %v3452_v9 }
 0x347   :  { %v1614_v22 = vadd.f32 1.0, %v1933_v18  ;;  %v1428_v58 = vmul.f32 %v1396_v26, %v3483_v2  ;;  %v1935_v20 = vpop.eup %1934  ;;  %v1095_v29 = vmul.f32 %v2768_v23, %v1074_v8  ;;  %v1463_v5 = vmul.f32 %v1431_v38, %v3455_v35 }
 0x348   :  { %v1429_v60 = vmul.f32 %v1397_v45, %v3486_v63  ;;  %v1096_v7 = vmul.f32 %v2770_v21, %v1058_v14  ;;  %v1391_v44 = vmul.f32 0.5, %v3402_v61  ;;  %v1615_v48 = vadd.f32 1.0, %v1935_v20  ;;  %v3750_v21 = vld [vmem:[#allocation9_spill] sm:$0xff] }
 0x349   :  { %v1646_v4 = vmul.f32 %v1614_v22, %v1390_v40  ;;  %v1642_v42 = vmul.f32 %v1610_v16, %v3441_v57  ;;  %v1643_v25 = vmul.f32 %v1611_v0, %v3448_v50  ;;  %v1460_v52 = vmul.f32 %v1428_v58, %v3483_v2  ;;  %v1161_v16 = vpop.permute.xlu1 %1160  ;;  %v3751_v50 = vld [vmem:[#allocation12_spill] sm:$0xff] }
 0x34a   :  { %v1461_v23 = vmul.f32 %v1429_v60, %v3486_v63  ;;  %v1647_v27 = vmul.f32 %v1615_v48, %v1391_v44  ;;  %v1644_v26 = vmul.f32 %v1612_v46, %v1388_v47  ;;  %v1394_v38 = vmul.f32 0.044715, %v3503_v12 }
 0x34b   :  { %1676 = vmatpush.msra.mxu0 %v1646_v4  ;;  %v1395_v45 = vmul.f32 0.044715, %v3506_v37  ;;  %v1262_v40 = vadd.f32 %v1095_v29, %v3750_v21  ;;  %v1645_v18 = vmul.f32 %v1613_v1, %v1389_v43  ;;  %v1494_v61 = vadd.f32 %v1462_v59, %v3452_v9 }
 0x34c   :  { %v1495_v57 = vadd.f32 %v1463_v5, %v3455_v35  ;;  %v1263_v0 = vadd.f32 %v1096_v7, %v3751_v50  ;;  %1705 = vmatpush.msra.mxu1 %v1647_v27  ;;  %v1609_v8 = vadd.f32 1.0, %v3458_v51  ;;  %v1426_v47 = vmul.f32 %v1394_v38, %v3503_v12 }
 0x34d   :  { %1677 = vmatpush.msra.mxu0 %v1644_v26  ;;  %v1129_v14 = vpop.permute.xlu0 %1128  ;;  %v1427_v46 = vmul.f32 %v1395_v45, %v3506_v37  ;;  %v1492_v1 = vadd.f32 %v1460_v52, %v3483_v2  ;;  %v1493_v58 = vadd.f32 %v1461_v23, %v3486_v63  ;;  %v1607_v51 = vadd.f32 1.0, %v3434_v31  ;;  %v3752_v26 = vld [vmem:[#allocation3_spill] sm:$0xff]  ;;  %v3753_v45 = vld [vmem:[#allocation10_spill] sm:$0xff] }
 0x34e   :  { %v1193_v22 = vsel %vm1192_vm2, %v1129_v14, %v1161_v16  ;;  %v1209_v43 = vsel %vm1192_vm2, %v1161_v16, %v1129_v14  ;;  %1706 = vmatpush.msra.mxu1 %v1645_v18  ;;  %v1458_v59 = vmul.f32 %v1426_v47, %v3503_v12  ;;  %v1638_v5 = vmul.f32 %v3480_v6, %v3360_v15  ;;  %v3757_v16 = vld [vmem:[#allocation14_spill] sm:$0xff]  ;;  %v3759_v47 = vld [vmem:[#allocation11_spill] sm:$0xff] }
 0x34f   :  { %v1230_v20 = vmul.f32 %v2946_v32, %v1193_v22  ;;  %v1231_v29 = vmul.f32 %v2948_v30, %v1209_v43  ;;  %1678 = vmatpush.msra.mxu0 %v1642_v42  ;;  %v1526_v60 = vmul.f32 0.7978845, %v1494_v61  ;;  %v1459_v7 = vmul.f32 %v1427_v46, %v3506_v37  ;;  %v3756_v61 = vld [vmem:[#allocation4_spill] sm:$0xff] }
 0x350   :  { %1707 = vmatpush.msra.mxu1 %v1643_v25  ;;  %v1641_v32 = vmul.f32 %v1609_v8, %v3414_v24  ;;  %v1527_v30 = vmul.f32 0.7978845, %v1495_v57  ;;  %v1636_v31 = vmul.f32 %v3443_v28, %v3333_v3  ;;  %v1524_v48 = vmul.f32 0.7978845, %v1492_v1  ;;  %v3758_v8 = vld [vmem:[#allocation19_spill] sm:$0xff]  ;;  %v3760_v22 = vld [vmem:[#allocation8_spill] sm:$0xff] }
 0x351   :  { %v1294_v4 = vadd.f32 %v1262_v40, %v1230_v20  ;;  %v1295_v44 = vadd.f32 %v1263_v0, %v1231_v29  ;;  %1679 = vmatpush.msra.mxu0 %v3490_v49  ;;  %v1490_v42 = vadd.f32 %v1458_v59, %v3503_v12  ;;  %v1491_v15 = vadd.f32 %v1459_v7, %v3506_v37  ;;  %v3754_v40 = vld [vmem:[#allocation5_spill] sm:$0xff]  ;;  %v3761_v20 = vld [vmem:[#allocation22_spill] sm:$0xff] }
 0x352   :  { %1708 = vmatpush.msra.mxu1 %v1641_v32  ;;  %v1639_v49 = vmul.f32 %v1607_v51, %v3365_v10  ;;  %v1525_v24 = vmul.f32 0.7978845, %v1493_v58  ;;  %v1601_v25 = vadd.f32 1.0, %v3351_v56  ;;  %v1598_v3 = vadd.f32 1.0, %v3313_v53  ;;  %v3762_v51 = vld [vmem:[#allocation20_spill] sm:$0xff] }
 0x353   :  { %v3549_v11 = vadd.f32 %v3015_v54, %v1294_v4  ;;  %v3552_v6 = vadd.f32 %v3015_v54, %v1295_v44  ;;  %1680 = vmatpush.msra.mxu0 %v1638_v5  ;;  %1936 = vtanh.f32 %v1526_v60  ;;  %v1522_v28 = vmul.f32 0.7978845, %v1490_v42  ;;  %v3763_v5 = vld [vmem:[#allocation17_spill] sm:$0xff]  ;;  %v3764_v44 = vld [vmem:[#allocation18_spill] sm:$0xff] }
 0x354   :  { %1709 = vmatpush.msra.mxu1 %v1639_v49  ;;  %v1637_v52 = vmul.f32 %v1605_v34, %v3345_v19  ;;  %v1634_v23 = vmul.f32 %v3373_v33, %v3309_v36  ;;  %1938 = vtanh.f32 %v1527_v30  ;;  %v1599_v27 = vadd.f32 1.0, %v3335_v39  ;;  %v3765_v49 = vld [vmem:[#allocation21_spill] sm:$0xff] }
 0x355   :  { %1681 = vmatpush.msra.mxu0 %v1636_v31  ;;  %v1392_v54 = vmul.f32 0.044715, %v3549_v11  ;;  %1940 = vtanh.f32 %v1524_v48  ;;  %v1523_v10 = vmul.f32 0.7978845, %v1491_v15  ;;  %v1393_v56 = vmul.f32 0.044715, %v3552_v6 }
 0x356   :  { %1710 = vmatpush.msra.mxu1 %v1637_v52  ;;  %v1635_v53 = vmul.f32 %v3390_v13, %v3321_v55  ;;  %v1632_v19 = vmul.f32 %v3349_v17, %v3283_v62  ;;  %1942 = vtanh.f32 %v1525_v24  ;;  %v1375_v33 = vmul.f32 0.5, %v3144_v41  ;;  %v3755_v13 = vld [vmem:[#allocation6_spill] sm:$0xff] }
 0x357   :  { %1682 = vmatpush.msra.mxu0 %v1634_v23  ;;  %v1424_v36 = vmul.f32 %v1392_v54, %v3549_v11  ;;  %v1594_v38 = vadd.f32 1.0, %v3752_v26  ;;  %1944 = vtanh.f32 %v1522_v28  ;;  %v1425_v39 = vmul.f32 %v1393_v56, %v3552_v6 }
 0x358   :  { %1711 = vmatpush.msra.mxu1 %v1635_v53  ;;  %v1633_v21 = vmul.f32 %v1601_v25, %v3753_v45  ;;  %v1630_v18 = vmul.f32 %v1598_v3, %v3754_v40  ;;  %v1597_v55 = vadd.f32 1.0, %v3755_v13  ;;  %v1595_v57 = vadd.f32 1.0, %v3756_v61  ;;  %v1659_v61 = vpop.permute.xlu2 %1658 }
 0x359   :  { %1683 = vmatpush.msra.mxu0 %v1632_v19  ;;  %v1456_v62 = vmul.f32 %v1424_v36, %v3549_v11  ;;  %v1937_v17 = vpop.eup %1936  ;;  %v1592_v41 = vadd.f32 1.0, %v3757_v16  ;;  %1946 = vtanh.f32 %v1523_v10  ;;  %v1457_v50 = vmul.f32 %v1425_v39, %v3552_v6 }
 0x35a   :  { %v1939_v0 = vpop.eup %1938  ;;  %1712 = vmatpush.msra.mxu1 %v1633_v21  ;;  %v1631_v14 = vmul.f32 %v1599_v27, %v1375_v33  ;;  %v1628_v46 = vmul.f32 %v3759_v47, %v3758_v8  ;;  %v1373_v43 = vmul.f32 0.5, %v3760_v22  ;;  %v1371_v29 = vmul.f32 0.5, %v3761_v20  ;;  %v1953_v8 = vld [vmem:[%s3657_s0 + $0x8] sm:$0xff] }
 0x35b   :  { %1684 = vmatpush.msra.mxu0 %v1630_v18  ;;  %v1488_v1 = vadd.f32 %v1456_v62, %v3549_v11  ;;  %v1941_v58 = vpop.eup %1940  ;;  %v1368_v59 = vmul.f32 0.5, %v3762_v51  ;;  %v1593_v34 = vadd.f32 1.0, %v3763_v5  ;;  %v1489_v60 = vadd.f32 %v1457_v50, %v3552_v6  ;;  %v1669_v5 = vpop.permute.xlu1 %1668 }
 0x35c   :  { %v1943_v7 = vpop.eup %1942  ;;  %1713 = vmatpush.msra.mxu1 %v1631_v14  ;;  %v1629_v4 = vmul.f32 %v1597_v55, %v1373_v43  ;;  %v1626_v32 = vmul.f32 %v1594_v38, %v3764_v44  ;;  %v1590_v30 = vadd.f32 1.0, %v1937_v17  ;;  %v1627_v42 = vmul.f32 %v1595_v57, %v1371_v29 }
 0x35d   :  { %1685 = vmatpush.msra.mxu0 %v1628_v46  ;;  %v1520_v31 = vmul.f32 0.7978845, %v1488_v1  ;;  %v1945_v48 = vpop.eup %1944  ;;  %v1624_v15 = vmul.f32 %v1592_v41, %v1368_v59  ;;  %v1369_v24 = vmul.f32 0.5, %v3765_v49  ;;  %v1521_v25 = vmul.f32 0.7978845, %v1489_v60  ;;  %v1664_v46 = vpop.permute.xlu0 %1663 }
 0x35e   :  { %1714 = vmatpush.msra.mxu1 %v1629_v4  ;;  %v1366_v3 = vmul.f32 0.5, %v3452_v9  ;;  %v1591_v28 = vadd.f32 1.0, %v1939_v0  ;;  %v1588_v52 = vadd.f32 1.0, %v1941_v58  ;;  %v1367_v27 = vmul.f32 0.5, %v3455_v35  ;;  %v1952_v0 = vld [vmem:[%s3657_s0] sm:$0xff] }
 0x35f   :  { %1686 = vmatpush.msra.mxu0 %v1626_v32  ;;  %1948 = vtanh.f32 %v1520_v31  ;;  %v1947_v23 = vpop.eup %1946  ;;  %v1625_v54 = vmul.f32 %v1593_v34, %v1369_v24  ;;  %v1364_v56 = vmul.f32 0.5, %v3483_v2  ;;  %v1589_v53 = vadd.f32 1.0, %v1943_v7 }
 0x360   :  { %1950 = vtanh.f32 %v1521_v25  ;;  %1715 = vmatpush.msra.mxu1 %v1627_v42  ;;  %v1622_v10 = vmul.f32 %v1590_v30, %v1366_v3  ;;  %v1586_v19 = vadd.f32 1.0, %v1945_v48  ;;  %v1365_v36 = vmul.f32 0.5, %v3486_v63  ;;  %v1674_v48 = vpop.permute.xlu2 %1673 }
 0x361   :  { %1687 = vmatpush.msra.mxu0 %v1624_v15  ;;  %v1623_v9 = vmul.f32 %v1591_v28, %v1367_v27  ;;  %v1620_v33 = vmul.f32 %v1588_v52, %v1364_v56  ;;  %v1362_v26 = vmul.f32 0.5, %v3503_v12  ;;  %v1587_v38 = vadd.f32 1.0, %v1947_v23  ;;  %v1648_v12 = vld [vmem:[%s3664_s5] sm:$0xff] }
 0x362   :  { %1716 = vmatpush.msra.mxu1 %v1625_v54  ;;  %v1621_v35 = vmul.f32 %v1589_v53, %v1365_v36  ;;  %v1363_v21 = vmul.f32 0.5, %v3506_v37  ;;  %v1360_v2 = vmul.f32 0.5, %v3549_v11  ;;  %v1361_v13 = vmul.f32 0.5, %v3552_v6  ;;  %v1649_v37 = vld [vmem:[%s3664_s5 + $0x8] sm:$0xff]  ;;  %v1650_v11 = vld [vmem:[%s3664_s5 + $0x10] sm:$0xff]  ;;  %v1651_v6 = vld [vmem:[%s3664_s5 + $0x18] sm:$0xff] }
 0x363   :  { %1688 = vmatpush.msra.mxu0 %v1622_v10  ;;  %v1618_v45 = vmul.f32 %v1586_v19, %v1362_v26 }
 0x364   :  { %1717 = vmatpush.msra.mxu1 %v1623_v9  ;;  %v1619_v63 = vmul.f32 %v1587_v38, %v1363_v21 }
 0x365   :  { %v1949_v39 = vpop.eup %1948  ;;  %1689 = vmatpush.msra.mxu0 %v1620_v33 }
 0x366   :  { %v1951_v40 = vpop.eup %1950  ;;  %v1584_v18 = vadd.f32 1.0, %v1949_v39  ;;  %1718 = vmatpush.msra.mxu1 %v1621_v35 }
 0x367   :  { %1690 = vmatpush.msra.mxu0 %v1618_v45  ;;  %v1585_v55 = vadd.f32 1.0, %v1951_v40 }
 0x368   :  { %v1616_v62 = vmul.f32 %v1584_v18, %v1360_v2  ;;  %1719 = vmatpush.msra.mxu1 %v1619_v63 }
 0x369   :  { %v1617_v17 = vmul.f32 %v1585_v55, %v1361_v13 }
 0x36a   :  { %1691 = vmatpush.msra.mxu0 %v1616_v62 }
 0x36b   :  { %1720 = vmatpush.msra.mxu1 %v1617_v17  ;;  %1692 = vmatmul.f32.vlgmr.msra.gmra.mxu0 %v1648_v12 }
 0x36c   :  { %1721 = vmatmul.f32.vlgmr.msra.gmra.mxu1 %v1648_v12 }
 0x373   :  { %1695 = vmatmul.f32.gmra.mxu0 %v1649_v37 }
 0x374   :  { %1724 = vmatmul.f32.gmra.mxu1 %v1649_v37 }
 0x37b   :  { %1698 = vmatmul.f32.gmra.mxu0 %v1650_v11 }
 0x37c   :  { %1727 = vmatmul.f32.gmra.mxu1 %v1650_v11 }
 0x383   :  { %1701 = vmatmul.f32.gmra.mxu0 %v1651_v6 }
 0x384   :  { %1730 = vmatmul.f32.gmra.mxu1 %v1651_v6 }
 0x3e8   :  { %v1693_v57 = vpop.f32.mrf.mxu0 }
 0x3e9   :  { %v1694_v16 = vadd.f32 %v1693_v57, %v1659_v61  ;;  %v1722_v41 = vpop.f32.mrf.mxu1 }
 0x3ea   :  { %v1723_v50 = vadd.f32 %v1722_v41, %v1659_v61 }
 0x3eb   :  { %v1734_v14 = vadd.f32 %v1952_v0, %v1694_v16 }
 0x3ec   :  { %v1735_v47 = vadd.f32 %v1953_v8, %v1723_v50 }
 0x3ed   :  { %1742 = vst [vmem:[%s3665_s9] sm:$0xff] %v1734_v14 }
 0x3ee   :  { %1743 = vst [vmem:[%s3665_s9 + $0x8] sm:$0xff] %v1735_v47 }
 0x3f0   :  { %v1696_v22 = vpop.f32.mrf.mxu0 }
 0x3f1   :  { %v1697_v43 = vadd.f32 %v1696_v22, %v1664_v46  ;;  %v1725_v1 = vpop.f32.mrf.mxu1 }
 0x3f2   :  { %v1726_v58 = vadd.f32 %v1725_v1, %v1664_v46 }
 0x3f5   :  { %v1954_v20 = vld [vmem:[%s3657_s0 + $0x10] sm:$0xff]  ;;  %v1955_v51 = vld [vmem:[%s3657_s0 + $0x18] sm:$0xff] }
 0x3f6   :  { %v1736_v29 = vadd.f32 %v1954_v20, %v1697_v43  ;;  %v1737_v59 = vadd.f32 %v1955_v51, %v1726_v58 }
 0x3f8   :  { %1744 = vst [vmem:[%s3665_s9 + $0x10] sm:$0xff] %v1736_v29  ;;  %v1699_v34 = vpop.f32.mrf.mxu0 }
 0x3f9   :  { %1745 = vst [vmem:[%s3665_s9 + $0x18] sm:$0xff] %v1737_v59  ;;  %v1700_v60 = vadd.f32 %v1699_v34, %v1669_v5  ;;  %v1728_v7 = vpop.f32.mrf.mxu1 }
 0x3fa   :  { %v1729_v4 = vadd.f32 %v1728_v7, %v1669_v5 }
 0x400   :  { %v1956_v44 = vld [vmem:[%s3657_s0 + $0x20] sm:$0xff]  ;;  %v1957_v30 = vld [vmem:[%s3657_s0 + $0x28] sm:$0xff]  ;;  %v1702_v42 = vpop.f32.mrf.mxu0 }
 0x401   :  { %v1738_v32 = vadd.f32 %v1956_v44, %v1700_v60  ;;  %v1739_v31 = vadd.f32 %v1957_v30, %v1729_v4  ;;  %v1703_v15 = vadd.f32 %v1702_v42, %v1674_v48  ;;  %v1731_v49 = vpop.f32.mrf.mxu1 }
 0x402   :  { %v1732_v24 = vadd.f32 %v1731_v49, %v1674_v48 }
 0x403   :  { %1746 = vst [vmem:[%s3665_s9 + $0x20] sm:$0xff] %v1738_v32 }
 0x404   :  { %1747 = vst [vmem:[%s3665_s9 + $0x28] sm:$0xff] %v1739_v31 }
 0x40b   :  { %v1958_v25 = vld [vmem:[%s3657_s0 + $0x30] sm:$0xff]  ;;  %v1959_v28 = vld [vmem:[%s3657_s0 + $0x38] sm:$0xff] }
 0x40c   :  { %v1740_v3 = vadd.f32 %v1958_v25, %v1703_v15  ;;  %v1741_v52 = vadd.f32 %v1959_v28, %v1732_v24 }
 0x40e   :  { %1748 = vst [vmem:[%s3665_s9 + $0x30] sm:$0xff] %v1740_v3 }
 0x40f   :  { %1749 = vst [vmem:[%s3665_s9 + $0x38] sm:$0xff] %v1741_v52 }

</bundles_post_ra>
